<compile_context>
chip_gen: v6e
topology: v6e:2x2x1
jax: 0.10.0
libtpu: 0.0.40
codegen_flags: <defaults>
</compile_context>

<pallas_src>
import functools

import jax
import jax.numpy as jnp
from jax.experimental import pallas as pl
from jax.experimental.pallas import tpu as pltpu


# --------------------------------------------------------------------------
# hyper-parameters (small, but consistent with the module's structure)
# --------------------------------------------------------------------------
B = 2            # batch
IN_CHANS = 3     # MODEL.SWIN.IN_CHANS (RGB image)
IMG = 16         # DATA.IMG_SIZE (small)
PATCH = 4        # MODEL.SWIN.PATCH_SIZE
EMBED = 32       # MODEL.SWIN.EMBED_DIM
HEADS = 2        # MODEL.SWIN.NUM_HEADS
WINDOW = 2       # MODEL.SWIN.WINDOW_SIZE (in patches)
MLP_RATIO = 4    # MODEL.SWIN.MLP_RATIO
N_CLASSES = 2    # num_classes = 2 for both heads

N_TOK = (IMG // PATCH) ** 2               # 16 patch tokens
SEG_OUT = N_CLASSES * PATCH * PATCH       # 32 decoded values per patch
CPP_IMG = IN_CHANS * PATCH * PATCH        # 48 image values per patch

# fixed row order of the packed 1-D parameter table ([V, 128] f32), shared between
# prepare_params (packing) and the kernel (static row lookups).
_VEC_NAMES = []
for _pfx in ("seg", "swin"):
    _VEC_NAMES += [f"{_pfx}_pe_b", f"{_pfx}_ln1_g", f"{_pfx}_ln1_b"]
    _VEC_NAMES += [f"{_pfx}_{_c}_b{_i}" for _c in "qkv" for _i in range(HEADS)]
    _VEC_NAMES += [f"{_pfx}_proj_b", f"{_pfx}_ln2_g", f"{_pfx}_ln2_b",
                   f"{_pfx}_fc1_b", f"{_pfx}_fc2_b", f"{_pfx}_lnf_g", f"{_pfx}_lnf_b"]
_VEC_NAMES += ["seg_dec_b"]
_VEC_IDX = {n: i for i, n in enumerate(_VEC_NAMES)}


# --------------------------------------------------------------------------
# in-kernel helpers (operate on loaded arrays; values stay in vregs/VMEM)
# --------------------------------------------------------------------------
def _layernorm(x, g, b):
    mu = jnp.mean(x, axis=-1, keepdims=True)
    xc = x - mu
    var = jnp.mean(xc * xc, axis=-1, keepdims=True)
    return xc * jax.lax.rsqrt(var + 1e-5) * g + b


def _attn_mlp_block(x, vec, pfx, qkvw, projw, fc1w, fc2w, *, heads, scale, mask):
    """Pre-norm MHSA + MLP transformer block on a resident [N, D] f32 slab.

    qkvw: [3*heads, D, hd] bf16 (q heads, then k heads, then v heads)
    projw: [heads, hd, D]  bf16 (head-concat folded into per-head row blocks)
    mask:  optional [N, N] additive mask (0 / -1e9) -> block-diagonal window attention.
    """
    N, D = x.shape
    hd = D // heads
    hidden = fc1w.shape[1]

    # --- attention (heads statically unrolled, no lane slicing of activations) ---
    h = _layernorm(x, vec(pfx + "_ln1_g"), vec(pfx + "_ln1_b")).astype(jnp.bfloat16)
    acc = None
    for i in range(heads):
        q = jnp.dot(h, qkvw[i], preferred_element_type=jnp.float32) \
            + vec(f"{pfx}_q_b{i}", hd)
        k = jnp.dot(h, qkvw[heads + i], preferred_element_type=jnp.float32) \
            + vec(f"{pfx}_k_b{i}", hd)
        v = jnp.dot(h, qkvw[2 * heads + i], preferred_element_type=jnp.float32) \
            + vec(f"{pfx}_v_b{i}", hd)
        # q @ k^T via dot_general contracting last dims (MXU-native, no transpose op)
        s = jax.lax.dot_general((q * scale).astype(jnp.bfloat16),
                                k.astype(jnp.bfloat16),
                                (((1,), (1,)), ((), ())),
                                preferred_element_type=jnp.float32)      # [N, N]
        if mask is not None:
            s = s + mask
        s = s - jnp.max(s, axis=-1, keepdims=True)                       # f32 softmax
        p = jnp.exp(s)
        p = p * pl.reciprocal(jnp.sum(p, axis=-1, keepdims=True), approx=True)
        o = jnp.dot(p.astype(jnp.bfloat16), v.astype(jnp.bfloat16),
                    preferred_element_type=jnp.float32)                  # [N, hd]
        c = jnp.dot(o.astype(jnp.bfloat16), projw[i],
                    preferred_element_type=jnp.float32)                  # [N, D]
        acc = c if acc is None else acc + c
    x = x + acc + vec(pfx + "_proj_b")                                   # residual

    # --- MLP ---
    h2 = _layernorm(x, vec(pfx + "_ln2_g"), vec(pfx + "_ln2_b")).astype(jnp.bfloat16)
    m = jax.nn.gelu(jnp.dot(h2, fc1w, preferred_element_type=jnp.float32)
                    + vec(pfx + "_fc1_b", hidden))
    x = x + jnp.dot(m.astype(jnp.bfloat16), fc2w,
                    preferred_element_type=jnp.float32) + vec(pfx + "_fc2_b")
    return x


# --------------------------------------------------------------------------
# fused LocNet kernel: one grid step per batch item, both branches resident
# --------------------------------------------------------------------------
def _locnet_kernel(patch_ref, mask_ref, vec_ref,
                   seg_pos_ref, seg_pe_ref, seg_qkv_ref, seg_proj_ref,
                   seg_fc1_ref, seg_fc2_ref, seg_dec_ref,
                   swin_pe_img_ref, swin_pe_seg_ref, swin_qkv_ref, swin_proj_ref,
                   swin_fc1_ref, swin_fc2_ref,
                   dec_out_ref, pool_out_ref, *, heads, scale):
    vp = vec_ref[...]                                  # [V, 128] f32, resident

    def vec(name, width=EMBED):
        r = _VEC_IDX[name]                             # static row index
        return vp[r:r + 1, :width]                     # [1, width]

    x_img = patch_ref[0].astype(jnp.bfloat16)          # [N, 48] image patches

    # ---------------- seg branch: ViT encoder + per-patch linear decoder ----------
    tok = (jnp.dot(x_img, seg_pe_ref[...], preferred_element_type=jnp.float32)
           + vec("seg_pe_b") + seg_pos_ref[...])                         # [N, D]
    tok = _attn_mlp_block(tok, vec, "seg",
                          seg_qkv_ref[...], seg_proj_ref[...],
                          seg_fc1_ref[...], seg_fc2_ref[...],
                          heads=heads, scale=scale, mask=None)
    tok = _layernorm(tok, vec("seg_lnf_g"), vec("seg_lnf_b"))
    dec = (jnp.dot(tok.astype(jnp.bfloat16), seg_dec_ref[...],
                   preferred_element_type=jnp.float32)
           + vec("seg_dec_b", SEG_OUT))                                  # [N, 32] logits
    dec_out_ref[0] = dec

    # ---------------- swin branch: concat folded into split patch embed ------------
    # torch.cat((img, seg_pred), dim=1) @ W_pe  ==  img_patches @ W_pe[:48]
    #                                             + seg_patches @ W_pe[48:]
    tok2 = (jnp.dot(x_img, swin_pe_img_ref[...], preferred_element_type=jnp.float32)
            + jnp.dot(dec.astype(jnp.bfloat16), swin_pe_seg_ref[...],
                      preferred_element_type=jnp.float32)
            + vec("swin_pe_b"))                                          # [N, D]
    # window attention == full attention with a block-diagonal (per-window) mask
    tok2 = _attn_mlp_block(tok2, vec, "swin",
                           swin_qkv_ref[...], swin_proj_ref[...],
                           swin_fc1_ref[...], swin_fc2_ref[...],
                           heads=heads, scale=scale, mask=mask_ref[...])
    tok2 = _layernorm(tok2, vec("swin_lnf_g"), vec("swin_lnf_b"))
    pool_out_ref[0] = jnp.mean(tok2, axis=0, keepdims=True)              # [1, D]


# --------------------------------------------------------------------------
# glue (plain JAX) + wrapper
# --------------------------------------------------------------------------
def _im2col(img):
    """NCHW -> [B, num_patches, C*P*P] (matches conv patch-embed weight flattening)."""
    Bb, C, H, W = img.shape
    nh, nw = H // PATCH, W // PATCH
    x = img.reshape(Bb, C, nh, PATCH, nw, PATCH)
    return x.transpose(0, 2, 4, 1, 3, 5).reshape(Bb, nh * nw, C * PATCH * PATCH)


def _window_mask(nh, nw, ws):
    """[N, N] additive mask: 0 inside a window, -1e9 across windows."""
    r = jnp.arange(nh * nw)
    row, col = r // nw, r % nw
    win = (row // ws) * (nw // ws) + (col // ws)
    same = win[:, None] == win[None, :]
    return jnp.where(same, 0.0, -1e9).astype(jnp.float32)


def loc_net_forward(img, prep):
    """img [B, 3, H, W], prepared params -> (class_pred [B, 2], seg_pred [B, 2, H, W])."""
    Bb = img.shape[0]
    nh = nw = IMG // PATCH
    patches = _im2col(img)                                     # [B, N, 48] f32

    weight_names = ["seg_pos", "seg_pe_w", "seg_qkv", "seg_proj", "seg_fc1",
                    "seg_fc2", "seg_dec_w", "swin_pe_img", "swin_pe_seg",
                    "swin_qkv", "swin_proj", "swin_fc1", "swin_fc2"]
    consts = [prep["mask"], prep["vec"]] + [prep[k] for k in weight_names]

    def const_spec(a):
        ndim = a.ndim

        def idx(b):
            return (0,) * ndim
        return pl.BlockSpec(a.shape, idx)

    kernel = functools.partial(_locnet_kernel, heads=HEADS,
                               scale=(EMBED // HEADS) ** -0.5)
    dec, pooled = pl.pallas_call(
        kernel,
        grid=(Bb,),                                            # 2 parallel steps (2 TCs on v7x)
        in_specs=[pl.BlockSpec((1, N_TOK, CPP_IMG), lambda b: (b, 0, 0))]
                 + [const_spec(a) for a in consts],
        out_specs=(pl.BlockSpec((1, N_TOK, SEG_OUT), lambda b: (b, 0, 0)),
                   pl.BlockSpec((1, 1, EMBED), lambda b: (b, 0, 0))),
        out_shape=(jax.ShapeDtypeStruct((Bb, N_TOK, SEG_OUT), jnp.float32),
                   jax.ShapeDtypeStruct((Bb, 1, EMBED), jnp.float32)),
        compiler_params=pltpu.CompilerParams(dimension_semantics=("parallel",)),
    )(patches, *consts)

    # tiny tail ops in XLA: 32x2 classification head + seg un-patchify for the return
    class_pred = pooled[:, 0, :] @ prep["head_w"] + prep["head_b"]        # [B, 2]
    seg_pred = dec.reshape(Bb, nh, nw, N_CLASSES, PATCH, PATCH)
    seg_pred = seg_pred.transpose(0, 3, 1, 4, 2, 5).reshape(Bb, N_CLASSES, IMG, IMG)
    return class_pred, seg_pred


# --------------------------------------------------------------------------
# parameters: natural (module-like) layout + one-time repack into kernel layout
# --------------------------------------------------------------------------
def _init_block(key, dim, hidden):
    ks = jax.random.split(key, 4)
    n = lambda k, s: 0.02 * jax.random.normal(k, s, jnp.float32)
    return {
        "ln1_g": jnp.ones((dim,), jnp.float32), "ln1_b": jnp.zeros((dim,), jnp.float32),
        "qkv_w": n(ks[0], (dim, 3 * dim)), "qkv_b": jnp.zeros((3 * dim,), jnp.float32),
        "proj_w": n(ks[1], (dim, dim)), "proj_b": jnp.zeros((dim,), jnp.float32),
        "ln2_g": jnp.ones((dim,), jnp.float32), "ln2_b": jnp.zeros((dim,), jnp.float32),
        "fc1_w": n(ks[2], (dim, hidden)), "fc1_b": jnp.zeros((hidden,), jnp.float32),
        "fc2_w": n(ks[3], (hidden, dim)), "fc2_b": jnp.zeros((dim,), jnp.float32),
    }


def init_params(key):
    hidden = EMBED * MLP_RATIO
    keys = jax.random.split(key, 8)
    n = lambda k, s: 0.02 * jax.random.normal(k, s, jnp.float32)
    seg = {
        "pe_w": n(keys[0], (CPP_IMG, EMBED)),
        "pe_b": jnp.zeros((EMBED,), jnp.float32),
        "pos": n(keys[1], (N_TOK, EMBED)),
        "block": _init_block(keys[2], EMBED, hidden),
        "lnf_g": jnp.ones((EMBED,), jnp.float32),
        "lnf_b": jnp.zeros((EMBED,), jnp.float32),
        "dec_w": n(keys[3], (EMBED, SEG_OUT)),
        "dec_b": jnp.zeros((SEG_OUT,), jnp.float32),
    }
    swin = {
        "pe_w": n(keys[4], ((IN_CHANS + N_CLASSES) * PATCH * PATCH, EMBED)),
        "pe_b": jnp.zeros((EMBED,), jnp.float32),
        "block": _init_block(keys[5], EMBED, hidden),
        "lnf_g": jnp.ones((EMBED,), jnp.float32),
        "lnf_b": jnp.zeros((EMBED,), jnp.float32),
        "head_w": n(keys[6], (EMBED, N_CLASSES)),
        "head_b": jnp.zeros((N_CLASSES,), jnp.float32),
    }
    return {"seg": seg, "swin": swin}


def prepare_params(params):
    """One-time (outside the jitted forward) repack of module-layout weights into the
    fused-kernel layout: bf16 matmul weights, per-head qkv/proj slices with a leading
    head axis, and all 1-D gains/biases packed into one [33, 128] f32 table."""
    D, Hh = EMBED, HEADS
    hd = D // Hh
    vec_map = {}

    def repack_block(pfx, blk):
        mats = []
        for c, cname in enumerate("qkv"):
            w = blk["qkv_w"][:, c * D:(c + 1) * D]
            bvec = blk["qkv_b"][c * D:(c + 1) * D]
            for i in range(Hh):
                mats.append(w[:, i * hd:(i + 1) * hd])
                vec_map[f"{pfx}_{cname}_b{i}"] = bvec[i * hd:(i + 1) * hd]
        vec_map[f"{pfx}_ln1_g"] = blk["ln1_g"]; vec_map[f"{pfx}_ln1_b"] = blk["ln1_b"]
        vec_map[f"{pfx}_ln2_g"] = blk["ln2_g"]; vec_map[f"{pfx}_ln2_b"] = blk["ln2_b"]
        vec_map[f"{pfx}_proj_b"] = blk["proj_b"]
        vec_map[f"{pfx}_fc1_b"] = blk["fc1_b"]; vec_map[f"{pfx}_fc2_b"] = blk["fc2_b"]
        return {
            f"{pfx}_qkv": jnp.stack(mats, 0).astype(jnp.bfloat16),            # [3H, D, hd]
            f"{pfx}_proj": blk["proj_w"].reshape(Hh, hd, D).astype(jnp.bfloat16),
            f"{pfx}_fc1": blk["fc1_w"].astype(jnp.bfloat16),
            f"{pfx}_fc2": blk["fc2_w"].astype(jnp.bfloat16),
        }

    seg, swin = params["seg"], params["swin"]
    prep = {}
    prep.update(repack_block("seg", seg["block"]))
    prep.update(repack_block("swin", swin["block"]))

    vec_map["seg_pe_b"] = seg["pe_b"]; vec_map["swin_pe_b"] = swin["pe_b"]
    vec_map["seg_lnf_g"] = seg["lnf_g"]; vec_map["seg_lnf_b"] = seg["lnf_b"]
    vec_map["swin_lnf_g"] = swin["lnf_g"]; vec_map["swin_lnf_b"] = swin["lnf_b"]
    vec_map["seg_dec_b"] = seg["dec_b"]

    rows = []
    for name in _VEC_NAMES:
        v = jnp.asarray(vec_map[name], jnp.float32).reshape(-1)
        rows.append(jnp.pad(v, (0, 128 - v.shape[0])))
    prep["vec"] = jnp.stack(rows, 0)                                           # [33, 128]

    prep["mask"] = _window_mask(IMG // PATCH, IMG // PATCH, WINDOW)            # [N, N]
    prep["seg_pos"] = seg["pos"].astype(jnp.float32)
    prep["seg_pe_w"] = seg["pe_w"].astype(jnp.bfloat16)
    prep["seg_dec_w"] = seg["dec_w"].astype(jnp.bfloat16)
    # split the swin patch-embed rows so the img/seg channel concat never materializes
    prep["swin_pe_img"] = swin["pe_w"][:CPP_IMG].astype(jnp.bfloat16)          # [48, D]
    prep["swin_pe_seg"] = swin["pe_w"][CPP_IMG:].astype(jnp.bfloat16)          # [32, D]
    prep["head_w"] = swin["head_w"]
    prep["head_b"] = swin["head_b"]
    return prep


# --------------------------------------------------------------------------
if __name__ == "__main__":
    key = jax.random.PRNGKey(0)
    pkey, xkey = jax.random.split(key)
    params = init_params(pkey)
    prep = prepare_params(params)
    img = jax.random.normal(xkey, (B, IN_CHANS, IMG, IMG), jnp.float32)

    fwd = jax.jit(loc_net_forward)
    class_pred, seg_pred = fwd(img, prep)
    jax.block_until_ready(class_pred)
    jax.block_until_ready(seg_pred)

    assert class_pred.shape == (B, N_CLASSES)
    assert seg_pred.shape == (B, N_CLASSES, IMG, IMG)
    assert bool(jnp.all(jnp.isfinite(class_pred)))
    assert bool(jnp.all(jnp.isfinite(seg_pred)))
    print("KERNEL_OK")
</pallas_src>

<mosaic_0001>
module attributes {stable_mosaic.version = 11 : i64} {
  func.func @_locnet_kernel(%arg0: i32, %arg1: memref<1x16x48xf32, #tpu.memory_space<vmem>>, %arg2: memref<16x16xf32, #tpu.memory_space<vmem>>, %arg3: memref<33x128xf32, #tpu.memory_space<vmem>>, %arg4: memref<16x32xf32, #tpu.memory_space<vmem>>, %arg5: memref<48x32xbf16, #tpu.memory_space<vmem>>, %arg6: memref<6x32x16xbf16, #tpu.memory_space<vmem>>, %arg7: memref<2x16x32xbf16, #tpu.memory_space<vmem>>, %arg8: memref<32x128xbf16, #tpu.memory_space<vmem>>, %arg9: memref<128x32xbf16, #tpu.memory_space<vmem>>, %arg10: memref<32x32xbf16, #tpu.memory_space<vmem>>, %arg11: memref<48x32xbf16, #tpu.memory_space<vmem>>, %arg12: memref<32x32xbf16, #tpu.memory_space<vmem>>, %arg13: memref<6x32x16xbf16, #tpu.memory_space<vmem>>, %arg14: memref<2x16x32xbf16, #tpu.memory_space<vmem>>, %arg15: memref<32x128xbf16, #tpu.memory_space<vmem>>, %arg16: memref<128x32xbf16, #tpu.memory_space<vmem>>, %arg17: memref<1x16x32xf32, #tpu.memory_space<vmem>>, %arg18: memref<1x1x32xf32, #tpu.memory_space<vmem>>) attributes {dimension_semantics = [#tpu.dimension_semantics<parallel>], iteration_bounds = array<i64: 2>, scalar_prefetch = 0 : i64, scratch_operands = 0 : i64, tpu.core_type = #tpu.core_type<tc>, window_params = [{transform_indices = @transform_0, window_bounds = array<i64: 1, 16, 48>}, {pipeline_mode = #tpu.pipeline_mode<synchronous>, transform_indices = @transform_1, window_bounds = array<i64: 16, 16>}, {pipeline_mode = #tpu.pipeline_mode<synchronous>, transform_indices = @transform_2, window_bounds = array<i64: 33, 128>}, {pipeline_mode = #tpu.pipeline_mode<synchronous>, transform_indices = @transform_3, window_bounds = array<i64: 16, 32>}, {pipeline_mode = #tpu.pipeline_mode<synchronous>, transform_indices = @transform_4, window_bounds = array<i64: 48, 32>}, {pipeline_mode = #tpu.pipeline_mode<synchronous>, transform_indices = @transform_5, window_bounds = array<i64: 6, 32, 16>}, {pipeline_mode = #tpu.pipeline_mode<synchronous>, transform_indices = @transform_6, window_bounds = array<i64: 2, 16, 32>}, {pipeline_mode = #tpu.pipeline_mode<synchronous>, transform_indices = @transform_7, window_bounds = array<i64: 32, 128>}, {pipeline_mode = #tpu.pipeline_mode<synchronous>, transform_indices = @transform_8, window_bounds = array<i64: 128, 32>}, {pipeline_mode = #tpu.pipeline_mode<synchronous>, transform_indices = @transform_9, window_bounds = array<i64: 32, 32>}, {pipeline_mode = #tpu.pipeline_mode<synchronous>, transform_indices = @transform_10, window_bounds = array<i64: 48, 32>}, {pipeline_mode = #tpu.pipeline_mode<synchronous>, transform_indices = @transform_11, window_bounds = array<i64: 32, 32>}, {pipeline_mode = #tpu.pipeline_mode<synchronous>, transform_indices = @transform_12, window_bounds = array<i64: 6, 32, 16>}, {pipeline_mode = #tpu.pipeline_mode<synchronous>, transform_indices = @transform_13, window_bounds = array<i64: 2, 16, 32>}, {pipeline_mode = #tpu.pipeline_mode<synchronous>, transform_indices = @transform_14, window_bounds = array<i64: 32, 128>}, {pipeline_mode = #tpu.pipeline_mode<synchronous>, transform_indices = @transform_15, window_bounds = array<i64: 128, 32>}, {transform_indices = @transform_16, window_bounds = array<i64: 1, 16, 32>}, {transform_indices = @transform_17, window_bounds = array<i64: 1, 1, 32>}]} {
    %c0 = arith.constant 0 : index
    %c0_0 = arith.constant 0 : index
    %0 = vector.load %arg3[%c0, %c0_0] : memref<33x128xf32, #tpu.memory_space<vmem>>, vector<33x128xf32>
    %c0_1 = arith.constant 0 : index
    %c0_2 = arith.constant 0 : index
    %c0_3 = arith.constant 0 : index
    %1 = vector.load %arg1[%c0_1, %c0_2, %c0_3] : memref<1x16x48xf32, #tpu.memory_space<vmem>>, vector<1x16x48xf32>
    %2 = vector.shape_cast %1 : vector<1x16x48xf32> to vector<16x48xf32>
    %3 = arith.truncf %2 : vector<16x48xf32> to vector<16x48xbf16>
    %c0_4 = arith.constant 0 : index
    %c0_5 = arith.constant 0 : index
    %4 = vector.load %arg5[%c0_4, %c0_5] : memref<48x32xbf16, #tpu.memory_space<vmem>>, vector<48x32xbf16>
    %cst = arith.constant dense<0.000000e+00> : vector<16x32xf32>
    %5 = tpu.matmul %3, %4, %cst {dimension_numbers = #tpu.dot_dimension_numbers<[1], [0], [0], [1], [0, 0, 1, 1], [], []>} : vector<16x48xbf16>, vector<48x32xbf16>, vector<16x32xf32> -> vector<16x32xf32>
    %6 = vector.extract_strided_slice %0 {offsets = [0, 0], sizes = [1, 32], strides = [1, 1]} : vector<33x128xf32> to vector<1x32xf32>
    %7 = vector.broadcast %6 : vector<1x32xf32> to vector<16x32xf32>
    %8 = arith.addf %5, %7 : vector<16x32xf32>
    %c0_6 = arith.constant 0 : index
    %c0_7 = arith.constant 0 : index
    %9 = vector.load %arg4[%c0_6, %c0_7] : memref<16x32xf32, #tpu.memory_space<vmem>>, vector<16x32xf32>
    %10 = arith.addf %8, %9 : vector<16x32xf32>
    %c0_8 = arith.constant 0 : index
    %c0_9 = arith.constant 0 : index
    %c0_10 = arith.constant 0 : index
    %11 = vector.load %arg6[%c0_8, %c0_9, %c0_10] : memref<6x32x16xbf16, #tpu.memory_space<vmem>>, vector<6x32x16xbf16>
    %c0_11 = arith.constant 0 : index
    %c0_12 = arith.constant 0 : index
    %c0_13 = arith.constant 0 : index
    %12 = vector.load %arg7[%c0_11, %c0_12, %c0_13] : memref<2x16x32xbf16, #tpu.memory_space<vmem>>, vector<2x16x32xbf16>
    %c0_14 = arith.constant 0 : index
    %c0_15 = arith.constant 0 : index
    %13 = vector.load %arg8[%c0_14, %c0_15] : memref<32x128xbf16, #tpu.memory_space<vmem>>, vector<32x128xbf16>
    %c0_16 = arith.constant 0 : index
    %c0_17 = arith.constant 0 : index
    %14 = vector.load %arg9[%c0_16, %c0_17] : memref<128x32xbf16, #tpu.memory_space<vmem>>, vector<128x32xbf16>
    %15 = vector.extract_strided_slice %0 {offsets = [1, 0], sizes = [1, 32], strides = [1, 1]} : vector<33x128xf32> to vector<1x32xf32>
    %16 = vector.extract_strided_slice %0 {offsets = [2, 0], sizes = [1, 32], strides = [1, 1]} : vector<33x128xf32> to vector<1x32xf32>
    %cst_18 = arith.constant dense<0.000000e+00> : vector<16xf32>
    %17 = vector.multi_reduction <add>, %10, %cst_18 [1] : vector<16x32xf32> to vector<16xf32>
    %18 = vector.shape_cast %17 : vector<16xf32> to vector<16x1xf32>
    %cst_19 = arith.constant 3.200000e+01 : f32
    %19 = vector.broadcast %cst_19 : f32 to vector<16x1xf32>
    %20 = arith.divf %18, %19 : vector<16x1xf32>
    %21 = vector.broadcast %20 : vector<16x1xf32> to vector<16x32xf32>
    %22 = arith.subf %10, %21 : vector<16x32xf32>
    %23 = arith.mulf %22, %22 : vector<16x32xf32>
    %cst_20 = arith.constant dense<0.000000e+00> : vector<16xf32>
    %24 = vector.multi_reduction <add>, %23, %cst_20 [1] : vector<16x32xf32> to vector<16xf32>
    %25 = vector.shape_cast %24 : vector<16xf32> to vector<16x1xf32>
    %cst_21 = arith.constant 3.200000e+01 : f32
    %26 = vector.broadcast %cst_21 : f32 to vector<16x1xf32>
    %27 = arith.divf %25, %26 : vector<16x1xf32>
    %cst_22 = arith.constant 9.99999974E-6 : f32
    %28 = vector.broadcast %cst_22 : f32 to vector<16x1xf32>
    %29 = arith.addf %27, %28 : vector<16x1xf32>
    %30 = math.rsqrt %29 : vector<16x1xf32>
    %31 = vector.broadcast %30 : vector<16x1xf32> to vector<16x32xf32>
    %32 = arith.mulf %22, %31 : vector<16x32xf32>
    %33 = vector.broadcast %15 : vector<1x32xf32> to vector<16x32xf32>
    %34 = arith.mulf %32, %33 : vector<16x32xf32>
    %35 = vector.broadcast %16 : vector<1x32xf32> to vector<16x32xf32>
    %36 = arith.addf %34, %35 : vector<16x32xf32>
    %37 = arith.truncf %36 : vector<16x32xf32> to vector<16x32xbf16>
    %38 = vector.extract_strided_slice %11 {offsets = [0, 0, 0], sizes = [1, 32, 16], strides = [1, 1, 1]} : vector<6x32x16xbf16> to vector<1x32x16xbf16>
    %39 = vector.shape_cast %38 : vector<1x32x16xbf16> to vector<32x16xbf16>
    %cst_23 = arith.constant dense<0.000000e+00> : vector<16x16xf32>
    %40 = tpu.matmul %37, %39, %cst_23 {dimension_numbers = #tpu.dot_dimension_numbers<[1], [0], [0], [1], [0, 0, 1, 1], [], []>} : vector<16x32xbf16>, vector<32x16xbf16>, vector<16x16xf32> -> vector<16x16xf32>
    %41 = vector.extract_strided_slice %0 {offsets = [3, 0], sizes = [1, 16], strides = [1, 1]} : vector<33x128xf32> to vector<1x16xf32>
    %42 = vector.broadcast %41 : vector<1x16xf32> to vector<16x16xf32>
    %43 = arith.addf %40, %42 : vector<16x16xf32>
    %44 = vector.extract_strided_slice %11 {offsets = [2, 0, 0], sizes = [1, 32, 16], strides = [1, 1, 1]} : vector<6x32x16xbf16> to vector<1x32x16xbf16>
    %45 = vector.shape_cast %44 : vector<1x32x16xbf16> to vector<32x16xbf16>
    %cst_24 = arith.constant dense<0.000000e+00> : vector<16x16xf32>
    %46 = tpu.matmul %37, %45, %cst_24 {dimension_numbers = #tpu.dot_dimension_numbers<[1], [0], [0], [1], [0, 0, 1, 1], [], []>} : vector<16x32xbf16>, vector<32x16xbf16>, vector<16x16xf32> -> vector<16x16xf32>
    %47 = vector.extract_strided_slice %0 {offsets = [5, 0], sizes = [1, 16], strides = [1, 1]} : vector<33x128xf32> to vector<1x16xf32>
    %48 = vector.broadcast %47 : vector<1x16xf32> to vector<16x16xf32>
    %49 = arith.addf %46, %48 : vector<16x16xf32>
    %50 = vector.extract_strided_slice %11 {offsets = [4, 0, 0], sizes = [1, 32, 16], strides = [1, 1, 1]} : vector<6x32x16xbf16> to vector<1x32x16xbf16>
    %51 = vector.shape_cast %50 : vector<1x32x16xbf16> to vector<32x16xbf16>
    %cst_25 = arith.constant dense<0.000000e+00> : vector<16x16xf32>
    %52 = tpu.matmul %37, %51, %cst_25 {dimension_numbers = #tpu.dot_dimension_numbers<[1], [0], [0], [1], [0, 0, 1, 1], [], []>} : vector<16x32xbf16>, vector<32x16xbf16>, vector<16x16xf32> -> vector<16x16xf32>
    %53 = vector.extract_strided_slice %0 {offsets = [7, 0], sizes = [1, 16], strides = [1, 1]} : vector<33x128xf32> to vector<1x16xf32>
    %54 = vector.broadcast %53 : vector<1x16xf32> to vector<16x16xf32>
    %55 = arith.addf %52, %54 : vector<16x16xf32>
    %cst_26 = arith.constant 2.500000e-01 : f32
    %56 = vector.broadcast %cst_26 : f32 to vector<16x16xf32>
    %57 = arith.mulf %43, %56 : vector<16x16xf32>
    %58 = arith.truncf %57 : vector<16x16xf32> to vector<16x16xbf16>
    %59 = arith.truncf %49 : vector<16x16xf32> to vector<16x16xbf16>
    %cst_27 = arith.constant dense<0.000000e+00> : vector<16x16xf32>
    %60 = tpu.matmul %58, %59, %cst_27 {dimension_numbers = #tpu.dot_dimension_numbers<[1], [1], [0], [0], [0, 0, 1, 0], [], []>} : vector<16x16xbf16>, vector<16x16xbf16>, vector<16x16xf32> -> vector<16x16xf32>
    %cst_28 = arith.constant dense<0xFF800000> : vector<16xf32>
    %61 = vector.multi_reduction <maximumf>, %60, %cst_28 [1] : vector<16x16xf32> to vector<16xf32>
    %62 = vector.shape_cast %61 : vector<16xf32> to vector<16x1xf32>
    %63 = vector.broadcast %62 : vector<16x1xf32> to vector<16x16xf32>
    %64 = arith.subf %60, %63 : vector<16x16xf32>
    %65 = math.exp %64 : vector<16x16xf32>
    %cst_29 = arith.constant dense<0.000000e+00> : vector<16xf32>
    %66 = vector.multi_reduction <add>, %65, %cst_29 [1] : vector<16x16xf32> to vector<16xf32>
    %67 = vector.shape_cast %66 : vector<16xf32> to vector<16x1xf32>
    %68 = tpu.reciprocal %67 {approx = true} : vector<16x1xf32> -> vector<16x1xf32>
    %69 = vector.broadcast %68 : vector<16x1xf32> to vector<16x16xf32>
    %70 = arith.mulf %65, %69 : vector<16x16xf32>
    %71 = arith.truncf %70 : vector<16x16xf32> to vector<16x16xbf16>
    %72 = arith.truncf %55 : vector<16x16xf32> to vector<16x16xbf16>
    %cst_30 = arith.constant dense<0.000000e+00> : vector<16x16xf32>
    %73 = tpu.matmul %71, %72, %cst_30 {dimension_numbers = #tpu.dot_dimension_numbers<[1], [0], [0], [1], [0, 0, 1, 1], [], []>} : vector<16x16xbf16>, vector<16x16xbf16>, vector<16x16xf32> -> vector<16x16xf32>
    %74 = arith.truncf %73 : vector<16x16xf32> to vector<16x16xbf16>
    %75 = vector.extract_strided_slice %12 {offsets = [0, 0, 0], sizes = [1, 16, 32], strides = [1, 1, 1]} : vector<2x16x32xbf16> to vector<1x16x32xbf16>
    %76 = vector.shape_cast %75 : vector<1x16x32xbf16> to vector<16x32xbf16>
    %cst_31 = arith.constant dense<0.000000e+00> : vector<16x32xf32>
    %77 = tpu.matmul %74, %76, %cst_31 {dimension_numbers = #tpu.dot_dimension_numbers<[1], [0], [0], [1], [0, 0, 1, 1], [], []>} : vector<16x16xbf16>, vector<16x32xbf16>, vector<16x32xf32> -> vector<16x32xf32>
    %78 = vector.extract_strided_slice %11 {offsets = [1, 0, 0], sizes = [1, 32, 16], strides = [1, 1, 1]} : vector<6x32x16xbf16> to vector<1x32x16xbf16>
    %79 = vector.shape_cast %78 : vector<1x32x16xbf16> to vector<32x16xbf16>
    %cst_32 = arith.constant dense<0.000000e+00> : vector<16x16xf32>
    %80 = tpu.matmul %37, %79, %cst_32 {dimension_numbers = #tpu.dot_dimension_numbers<[1], [0], [0], [1], [0, 0, 1, 1], [], []>} : vector<16x32xbf16>, vector<32x16xbf16>, vector<16x16xf32> -> vector<16x16xf32>
    %81 = vector.extract_strided_slice %0 {offsets = [4, 0], sizes = [1, 16], strides = [1, 1]} : vector<33x128xf32> to vector<1x16xf32>
    %82 = vector.broadcast %81 : vector<1x16xf32> to vector<16x16xf32>
    %83 = arith.addf %80, %82 : vector<16x16xf32>
    %84 = vector.extract_strided_slice %11 {offsets = [3, 0, 0], sizes = [1, 32, 16], strides = [1, 1, 1]} : vector<6x32x16xbf16> to vector<1x32x16xbf16>
    %85 = vector.shape_cast %84 : vector<1x32x16xbf16> to vector<32x16xbf16>
    %cst_33 = arith.constant dense<0.000000e+00> : vector<16x16xf32>
    %86 = tpu.matmul %37, %85, %cst_33 {dimension_numbers = #tpu.dot_dimension_numbers<[1], [0], [0], [1], [0, 0, 1, 1], [], []>} : vector<16x32xbf16>, vector<32x16xbf16>, vector<16x16xf32> -> vector<16x16xf32>
    %87 = vector.extract_strided_slice %0 {offsets = [6, 0], sizes = [1, 16], strides = [1, 1]} : vector<33x128xf32> to vector<1x16xf32>
    %88 = vector.broadcast %87 : vector<1x16xf32> to vector<16x16xf32>
    %89 = arith.addf %86, %88 : vector<16x16xf32>
    %90 = vector.extract_strided_slice %11 {offsets = [5, 0, 0], sizes = [1, 32, 16], strides = [1, 1, 1]} : vector<6x32x16xbf16> to vector<1x32x16xbf16>
    %91 = vector.shape_cast %90 : vector<1x32x16xbf16> to vector<32x16xbf16>
    %cst_34 = arith.constant dense<0.000000e+00> : vector<16x16xf32>
    %92 = tpu.matmul %37, %91, %cst_34 {dimension_numbers = #tpu.dot_dimension_numbers<[1], [0], [0], [1], [0, 0, 1, 1], [], []>} : vector<16x32xbf16>, vector<32x16xbf16>, vector<16x16xf32> -> vector<16x16xf32>
    %93 = vector.extract_strided_slice %0 {offsets = [8, 0], sizes = [1, 16], strides = [1, 1]} : vector<33x128xf32> to vector<1x16xf32>
    %94 = vector.broadcast %93 : vector<1x16xf32> to vector<16x16xf32>
    %95 = arith.addf %92, %94 : vector<16x16xf32>
    %cst_35 = arith.constant 2.500000e-01 : f32
    %96 = vector.broadcast %cst_35 : f32 to vector<16x16xf32>
    %97 = arith.mulf %83, %96 : vector<16x16xf32>
    %98 = arith.truncf %97 : vector<16x16xf32> to vector<16x16xbf16>
    %99 = arith.truncf %89 : vector<16x16xf32> to vector<16x16xbf16>
    %cst_36 = arith.constant dense<0.000000e+00> : vector<16x16xf32>
    %100 = tpu.matmul %98, %99, %cst_36 {dimension_numbers = #tpu.dot_dimension_numbers<[1], [1], [0], [0], [0, 0, 1, 0], [], []>} : vector<16x16xbf16>, vector<16x16xbf16>, vector<16x16xf32> -> vector<16x16xf32>
    %cst_37 = arith.constant dense<0xFF800000> : vector<16xf32>
    %101 = vector.multi_reduction <maximumf>, %100, %cst_37 [1] : vector<16x16xf32> to vector<16xf32>
    %102 = vector.shape_cast %101 : vector<16xf32> to vector<16x1xf32>
    %103 = vector.broadcast %102 : vector<16x1xf32> to vector<16x16xf32>
    %104 = arith.subf %100, %103 : vector<16x16xf32>
    %105 = math.exp %104 : vector<16x16xf32>
    %cst_38 = arith.constant dense<0.000000e+00> : vector<16xf32>
    %106 = vector.multi_reduction <add>, %105, %cst_38 [1] : vector<16x16xf32> to vector<16xf32>
    %107 = vector.shape_cast %106 : vector<16xf32> to vector<16x1xf32>
    %108 = tpu.reciprocal %107 {approx = true} : vector<16x1xf32> -> vector<16x1xf32>
    %109 = vector.broadcast %108 : vector<16x1xf32> to vector<16x16xf32>
    %110 = arith.mulf %105, %109 : vector<16x16xf32>
    %111 = arith.truncf %110 : vector<16x16xf32> to vector<16x16xbf16>
    %112 = arith.truncf %95 : vector<16x16xf32> to vector<16x16xbf16>
    %cst_39 = arith.constant dense<0.000000e+00> : vector<16x16xf32>
    %113 = tpu.matmul %111, %112, %cst_39 {dimension_numbers = #tpu.dot_dimension_numbers<[1], [0], [0], [1], [0, 0, 1, 1], [], []>} : vector<16x16xbf16>, vector<16x16xbf16>, vector<16x16xf32> -> vector<16x16xf32>
    %114 = arith.truncf %113 : vector<16x16xf32> to vector<16x16xbf16>
    %115 = vector.extract_strided_slice %12 {offsets = [1, 0, 0], sizes = [1, 16, 32], strides = [1, 1, 1]} : vector<2x16x32xbf16> to vector<1x16x32xbf16>
    %116 = vector.shape_cast %115 : vector<1x16x32xbf16> to vector<16x32xbf16>
    %cst_40 = arith.constant dense<0.000000e+00> : vector<16x32xf32>
    %117 = tpu.matmul %114, %116, %cst_40 {dimension_numbers = #tpu.dot_dimension_numbers<[1], [0], [0], [1], [0, 0, 1, 1], [], []>} : vector<16x16xbf16>, vector<16x32xbf16>, vector<16x32xf32> -> vector<16x32xf32>
    %118 = arith.addf %77, %117 : vector<16x32xf32>
    %119 = arith.addf %10, %118 : vector<16x32xf32>
    %120 = vector.extract_strided_slice %0 {offsets = [9, 0], sizes = [1, 32], strides = [1, 1]} : vector<33x128xf32> to vector<1x32xf32>
    %121 = vector.broadcast %120 : vector<1x32xf32> to vector<16x32xf32>
    %122 = arith.addf %119, %121 : vector<16x32xf32>
    %123 = vector.extract_strided_slice %0 {offsets = [10, 0], sizes = [1, 32], strides = [1, 1]} : vector<33x128xf32> to vector<1x32xf32>
    %124 = vector.extract_strided_slice %0 {offsets = [11, 0], sizes = [1, 32], strides = [1, 1]} : vector<33x128xf32> to vector<1x32xf32>
    %cst_41 = arith.constant dense<0.000000e+00> : vector<16xf32>
    %125 = vector.multi_reduction <add>, %122, %cst_41 [1] : vector<16x32xf32> to vector<16xf32>
    %126 = vector.shape_cast %125 : vector<16xf32> to vector<16x1xf32>
    %cst_42 = arith.constant 3.200000e+01 : f32
    %127 = vector.broadcast %cst_42 : f32 to vector<16x1xf32>
    %128 = arith.divf %126, %127 : vector<16x1xf32>
    %129 = vector.broadcast %128 : vector<16x1xf32> to vector<16x32xf32>
    %130 = arith.subf %122, %129 : vector<16x32xf32>
    %131 = arith.mulf %130, %130 : vector<16x32xf32>
    %cst_43 = arith.constant dense<0.000000e+00> : vector<16xf32>
    %132 = vector.multi_reduction <add>, %131, %cst_43 [1] : vector<16x32xf32> to vector<16xf32>
    %133 = vector.shape_cast %132 : vector<16xf32> to vector<16x1xf32>
    %cst_44 = arith.constant 3.200000e+01 : f32
    %134 = vector.broadcast %cst_44 : f32 to vector<16x1xf32>
    %135 = arith.divf %133, %134 : vector<16x1xf32>
    %cst_45 = arith.constant 9.99999974E-6 : f32
    %136 = vector.broadcast %cst_45 : f32 to vector<16x1xf32>
    %137 = arith.addf %135, %136 : vector<16x1xf32>
    %138 = math.rsqrt %137 : vector<16x1xf32>
    %139 = vector.broadcast %138 : vector<16x1xf32> to vector<16x32xf32>
    %140 = arith.mulf %130, %139 : vector<16x32xf32>
    %141 = vector.broadcast %123 : vector<1x32xf32> to vector<16x32xf32>
    %142 = arith.mulf %140, %141 : vector<16x32xf32>
    %143 = vector.broadcast %124 : vector<1x32xf32> to vector<16x32xf32>
    %144 = arith.addf %142, %143 : vector<16x32xf32>
    %145 = arith.truncf %144 : vector<16x32xf32> to vector<16x32xbf16>
    %cst_46 = arith.constant dense<0.000000e+00> : vector<16x128xf32>
    %146 = tpu.matmul %145, %13, %cst_46 {dimension_numbers = #tpu.dot_dimension_numbers<[1], [0], [0], [1], [0, 0, 1, 1], [], []>} : vector<16x32xbf16>, vector<32x128xbf16>, vector<16x128xf32> -> vector<16x128xf32>
    %147 = vector.extract_strided_slice %0 {offsets = [12, 0], sizes = [1, 128], strides = [1, 1]} : vector<33x128xf32> to vector<1x128xf32>
    %148 = vector.broadcast %147 : vector<1x128xf32> to vector<16x128xf32>
    %149 = arith.addf %146, %148 : vector<16x128xf32>
    %150 = arith.mulf %149, %149 : vector<16x128xf32>
    %151 = arith.mulf %149, %150 : vector<16x128xf32>
    %cst_47 = arith.constant 4.471500e-02 : f32
    %152 = vector.broadcast %cst_47 : f32 to vector<16x128xf32>
    %153 = arith.mulf %152, %151 : vector<16x128xf32>
    %154 = arith.addf %149, %153 : vector<16x128xf32>
    %cst_48 = arith.constant 0.797884583 : f32
    %155 = vector.broadcast %cst_48 : f32 to vector<16x128xf32>
    %156 = arith.mulf %155, %154 : vector<16x128xf32>
    %157 = math.tanh %156 : vector<16x128xf32>
    %cst_49 = arith.constant 1.000000e+00 : f32
    %158 = vector.broadcast %cst_49 : f32 to vector<16x128xf32>
    %159 = arith.addf %158, %157 : vector<16x128xf32>
    %cst_50 = arith.constant 5.000000e-01 : f32
    %160 = vector.broadcast %cst_50 : f32 to vector<16x128xf32>
    %161 = arith.mulf %160, %159 : vector<16x128xf32>
    %162 = arith.mulf %149, %161 : vector<16x128xf32>
    %163 = arith.truncf %162 : vector<16x128xf32> to vector<16x128xbf16>
    %cst_51 = arith.constant dense<0.000000e+00> : vector<16x32xf32>
    %164 = tpu.matmul %163, %14, %cst_51 {dimension_numbers = #tpu.dot_dimension_numbers<[1], [0], [0], [1], [0, 0, 1, 1], [], []>} : vector<16x128xbf16>, vector<128x32xbf16>, vector<16x32xf32> -> vector<16x32xf32>
    %165 = arith.addf %122, %164 : vector<16x32xf32>
    %166 = vector.extract_strided_slice %0 {offsets = [13, 0], sizes = [1, 32], strides = [1, 1]} : vector<33x128xf32> to vector<1x32xf32>
    %167 = vector.broadcast %166 : vector<1x32xf32> to vector<16x32xf32>
    %168 = arith.addf %165, %167 : vector<16x32xf32>
    %169 = vector.extract_strided_slice %0 {offsets = [14, 0], sizes = [1, 32], strides = [1, 1]} : vector<33x128xf32> to vector<1x32xf32>
    %170 = vector.extract_strided_slice %0 {offsets = [15, 0], sizes = [1, 32], strides = [1, 1]} : vector<33x128xf32> to vector<1x32xf32>
    %cst_52 = arith.constant dense<0.000000e+00> : vector<16xf32>
    %171 = vector.multi_reduction <add>, %168, %cst_52 [1] : vector<16x32xf32> to vector<16xf32>
    %172 = vector.shape_cast %171 : vector<16xf32> to vector<16x1xf32>
    %cst_53 = arith.constant 3.200000e+01 : f32
    %173 = vector.broadcast %cst_53 : f32 to vector<16x1xf32>
    %174 = arith.divf %172, %173 : vector<16x1xf32>
    %175 = vector.broadcast %174 : vector<16x1xf32> to vector<16x32xf32>
    %176 = arith.subf %168, %175 : vector<16x32xf32>
    %177 = arith.mulf %176, %176 : vector<16x32xf32>
    %cst_54 = arith.constant dense<0.000000e+00> : vector<16xf32>
    %178 = vector.multi_reduction <add>, %177, %cst_54 [1] : vector<16x32xf32> to vector<16xf32>
    %179 = vector.shape_cast %178 : vector<16xf32> to vector<16x1xf32>
    %cst_55 = arith.constant 3.200000e+01 : f32
    %180 = vector.broadcast %cst_55 : f32 to vector<16x1xf32>
    %181 = arith.divf %179, %180 : vector<16x1xf32>
    %cst_56 = arith.constant 9.99999974E-6 : f32
    %182 = vector.broadcast %cst_56 : f32 to vector<16x1xf32>
    %183 = arith.addf %181, %182 : vector<16x1xf32>
    %184 = math.rsqrt %183 : vector<16x1xf32>
    %185 = vector.broadcast %184 : vector<16x1xf32> to vector<16x32xf32>
    %186 = arith.mulf %176, %185 : vector<16x32xf32>
    %187 = vector.broadcast %169 : vector<1x32xf32> to vector<16x32xf32>
    %188 = arith.mulf %186, %187 : vector<16x32xf32>
    %189 = vector.broadcast %170 : vector<1x32xf32> to vector<16x32xf32>
    %190 = arith.addf %188, %189 : vector<16x32xf32>
    %191 = arith.truncf %190 : vector<16x32xf32> to vector<16x32xbf16>
    %c0_57 = arith.constant 0 : index
    %c0_58 = arith.constant 0 : index
    %192 = vector.load %arg10[%c0_57, %c0_58] : memref<32x32xbf16, #tpu.memory_space<vmem>>, vector<32x32xbf16>
    %cst_59 = arith.constant dense<0.000000e+00> : vector<16x32xf32>
    %193 = tpu.matmul %191, %192, %cst_59 {dimension_numbers = #tpu.dot_dimension_numbers<[1], [0], [0], [1], [0, 0, 1, 1], [], []>} : vector<16x32xbf16>, vector<32x32xbf16>, vector<16x32xf32> -> vector<16x32xf32>
    %194 = vector.extract_strided_slice %0 {offsets = [32, 0], sizes = [1, 32], strides = [1, 1]} : vector<33x128xf32> to vector<1x32xf32>
    %195 = vector.broadcast %194 : vector<1x32xf32> to vector<16x32xf32>
    %196 = arith.addf %193, %195 : vector<16x32xf32>
    %c0_60 = arith.constant 0 : index
    %c0_61 = arith.constant 0 : index
    %c0_62 = arith.constant 0 : index
    %197 = vector.load %arg17[%c0_60, %c0_61, %c0_62] : memref<1x16x32xf32, #tpu.memory_space<vmem>>, vector<1x16x32xf32>
    %198 = vector.shape_cast %197 : vector<1x16x32xf32> to vector<16x32xf32>
    %199 = vector.shape_cast %196 : vector<16x32xf32> to vector<1x16x32xf32>
    tpu.vector_store %arg17[%c0_60, %c0_61, %c0_62], %199 {strides = array<i32>} : memref<1x16x32xf32, #tpu.memory_space<vmem>>, vector<1x16x32xf32>,
    %c0_63 = arith.constant 0 : index
    %c0_64 = arith.constant 0 : index
    %200 = vector.load %arg11[%c0_63, %c0_64] : memref<48x32xbf16, #tpu.memory_space<vmem>>, vector<48x32xbf16>
    %cst_65 = arith.constant dense<0.000000e+00> : vector<16x32xf32>
    %201 = tpu.matmul %3, %200, %cst_65 {dimension_numbers = #tpu.dot_dimension_numbers<[1], [0], [0], [1], [0, 0, 1, 1], [], []>} : vector<16x48xbf16>, vector<48x32xbf16>, vector<16x32xf32> -> vector<16x32xf32>
    %202 = arith.truncf %196 : vector<16x32xf32> to vector<16x32xbf16>
    %c0_66 = arith.constant 0 : index
    %c0_67 = arith.constant 0 : index
    %203 = vector.load %arg12[%c0_66, %c0_67] : memref<32x32xbf16, #tpu.memory_space<vmem>>, vector<32x32xbf16>
    %cst_68 = arith.constant dense<0.000000e+00> : vector<16x32xf32>
    %204 = tpu.matmul %202, %203, %cst_68 {dimension_numbers = #tpu.dot_dimension_numbers<[1], [0], [0], [1], [0, 0, 1, 1], [], []>} : vector<16x32xbf16>, vector<32x32xbf16>, vector<16x32xf32> -> vector<16x32xf32>
    %205 = arith.addf %201, %204 : vector<16x32xf32>
    %206 = vector.extract_strided_slice %0 {offsets = [16, 0], sizes = [1, 32], strides = [1, 1]} : vector<33x128xf32> to vector<1x32xf32>
    %207 = vector.broadcast %206 : vector<1x32xf32> to vector<16x32xf32>
    %208 = arith.addf %205, %207 : vector<16x32xf32>
    %c0_69 = arith.constant 0 : index
    %c0_70 = arith.constant 0 : index
    %c0_71 = arith.constant 0 : index
    %209 = vector.load %arg13[%c0_69, %c0_70, %c0_71] : memref<6x32x16xbf16, #tpu.memory_space<vmem>>, vector<6x32x16xbf16>
    %c0_72 = arith.constant 0 : index
    %c0_73 = arith.constant 0 : index
    %c0_74 = arith.constant 0 : index
    %210 = vector.load %arg14[%c0_72, %c0_73, %c0_74] : memref<2x16x32xbf16, #tpu.memory_space<vmem>>, vector<2x16x32xbf16>
    %c0_75 = arith.constant 0 : index
    %c0_76 = arith.constant 0 : index
    %211 = vector.load %arg15[%c0_75, %c0_76] : memref<32x128xbf16, #tpu.memory_space<vmem>>, vector<32x128xbf16>
    %c0_77 = arith.constant 0 : index
    %c0_78 = arith.constant 0 : index
    %212 = vector.load %arg16[%c0_77, %c0_78] : memref<128x32xbf16, #tpu.memory_space<vmem>>, vector<128x32xbf16>
    %c0_79 = arith.constant 0 : index
    %c0_80 = arith.constant 0 : index
    %213 = vector.load %arg2[%c0_79, %c0_80] : memref<16x16xf32, #tpu.memory_space<vmem>>, vector<16x16xf32>
    %214 = vector.extract_strided_slice %0 {offsets = [17, 0], sizes = [1, 32], strides = [1, 1]} : vector<33x128xf32> to vector<1x32xf32>
    %215 = vector.extract_strided_slice %0 {offsets = [18, 0], sizes = [1, 32], strides = [1, 1]} : vector<33x128xf32> to vector<1x32xf32>
    %cst_81 = arith.constant dense<0.000000e+00> : vector<16xf32>
    %216 = vector.multi_reduction <add>, %208, %cst_81 [1] : vector<16x32xf32> to vector<16xf32>
    %217 = vector.shape_cast %216 : vector<16xf32> to vector<16x1xf32>
    %cst_82 = arith.constant 3.200000e+01 : f32
    %218 = vector.broadcast %cst_82 : f32 to vector<16x1xf32>
    %219 = arith.divf %217, %218 : vector<16x1xf32>
    %220 = vector.broadcast %219 : vector<16x1xf32> to vector<16x32xf32>
    %221 = arith.subf %208, %220 : vector<16x32xf32>
    %222 = arith.mulf %221, %221 : vector<16x32xf32>
    %cst_83 = arith.constant dense<0.000000e+00> : vector<16xf32>
    %223 = vector.multi_reduction <add>, %222, %cst_83 [1] : vector<16x32xf32> to vector<16xf32>
    %224 = vector.shape_cast %223 : vector<16xf32> to vector<16x1xf32>
    %cst_84 = arith.constant 3.200000e+01 : f32
    %225 = vector.broadcast %cst_84 : f32 to vector<16x1xf32>
    %226 = arith.divf %224, %225 : vector<16x1xf32>
    %cst_85 = arith.constant 9.99999974E-6 : f32
    %227 = vector.broadcast %cst_85 : f32 to vector<16x1xf32>
    %228 = arith.addf %226, %227 : vector<16x1xf32>
    %229 = math.rsqrt %228 : vector<16x1xf32>
    %230 = vector.broadcast %229 : vector<16x1xf32> to vector<16x32xf32>
    %231 = arith.mulf %221, %230 : vector<16x32xf32>
    %232 = vector.broadcast %214 : vector<1x32xf32> to vector<16x32xf32>
    %233 = arith.mulf %231, %232 : vector<16x32xf32>
    %234 = vector.broadcast %215 : vector<1x32xf32> to vector<16x32xf32>
    %235 = arith.addf %233, %234 : vector<16x32xf32>
    %236 = arith.truncf %235 : vector<16x32xf32> to vector<16x32xbf16>
    %237 = vector.extract_strided_slice %209 {offsets = [0, 0, 0], sizes = [1, 32, 16], strides = [1, 1, 1]} : vector<6x32x16xbf16> to vector<1x32x16xbf16>
    %238 = vector.shape_cast %237 : vector<1x32x16xbf16> to vector<32x16xbf16>
    %cst_86 = arith.constant dense<0.000000e+00> : vector<16x16xf32>
    %239 = tpu.matmul %236, %238, %cst_86 {dimension_numbers = #tpu.dot_dimension_numbers<[1], [0], [0], [1], [0, 0, 1, 1], [], []>} : vector<16x32xbf16>, vector<32x16xbf16>, vector<16x16xf32> -> vector<16x16xf32>
    %240 = vector.extract_strided_slice %0 {offsets = [19, 0], sizes = [1, 16], strides = [1, 1]} : vector<33x128xf32> to vector<1x16xf32>
    %241 = vector.broadcast %240 : vector<1x16xf32> to vector<16x16xf32>
    %242 = arith.addf %239, %241 : vector<16x16xf32>
    %243 = vector.extract_strided_slice %209 {offsets = [2, 0, 0], sizes = [1, 32, 16], strides = [1, 1, 1]} : vector<6x32x16xbf16> to vector<1x32x16xbf16>
    %244 = vector.shape_cast %243 : vector<1x32x16xbf16> to vector<32x16xbf16>
    %cst_87 = arith.constant dense<0.000000e+00> : vector<16x16xf32>
    %245 = tpu.matmul %236, %244, %cst_87 {dimension_numbers = #tpu.dot_dimension_numbers<[1], [0], [0], [1], [0, 0, 1, 1], [], []>} : vector<16x32xbf16>, vector<32x16xbf16>, vector<16x16xf32> -> vector<16x16xf32>
    %246 = vector.extract_strided_slice %0 {offsets = [21, 0], sizes = [1, 16], strides = [1, 1]} : vector<33x128xf32> to vector<1x16xf32>
    %247 = vector.broadcast %246 : vector<1x16xf32> to vector<16x16xf32>
    %248 = arith.addf %245, %247 : vector<16x16xf32>
    %249 = vector.extract_strided_slice %209 {offsets = [4, 0, 0], sizes = [1, 32, 16], strides = [1, 1, 1]} : vector<6x32x16xbf16> to vector<1x32x16xbf16>
    %250 = vector.shape_cast %249 : vector<1x32x16xbf16> to vector<32x16xbf16>
    %cst_88 = arith.constant dense<0.000000e+00> : vector<16x16xf32>
    %251 = tpu.matmul %236, %250, %cst_88 {dimension_numbers = #tpu.dot_dimension_numbers<[1], [0], [0], [1], [0, 0, 1, 1], [], []>} : vector<16x32xbf16>, vector<32x16xbf16>, vector<16x16xf32> -> vector<16x16xf32>
    %252 = vector.extract_strided_slice %0 {offsets = [23, 0], sizes = [1, 16], strides = [1, 1]} : vector<33x128xf32> to vector<1x16xf32>
    %253 = vector.broadcast %252 : vector<1x16xf32> to vector<16x16xf32>
    %254 = arith.addf %251, %253 : vector<16x16xf32>
    %cst_89 = arith.constant 2.500000e-01 : f32
    %255 = vector.broadcast %cst_89 : f32 to vector<16x16xf32>
    %256 = arith.mulf %242, %255 : vector<16x16xf32>
    %257 = arith.truncf %256 : vector<16x16xf32> to vector<16x16xbf16>
    %258 = arith.truncf %248 : vector<16x16xf32> to vector<16x16xbf16>
    %cst_90 = arith.constant dense<0.000000e+00> : vector<16x16xf32>
    %259 = tpu.matmul %257, %258, %cst_90 {dimension_numbers = #tpu.dot_dimension_numbers<[1], [1], [0], [0], [0, 0, 1, 0], [], []>} : vector<16x16xbf16>, vector<16x16xbf16>, vector<16x16xf32> -> vector<16x16xf32>
    %260 = arith.addf %259, %213 : vector<16x16xf32>
    %cst_91 = arith.constant dense<0xFF800000> : vector<16xf32>
    %261 = vector.multi_reduction <maximumf>, %260, %cst_91 [1] : vector<16x16xf32> to vector<16xf32>
    %262 = vector.shape_cast %261 : vector<16xf32> to vector<16x1xf32>
    %263 = vector.broadcast %262 : vector<16x1xf32> to vector<16x16xf32>
    %264 = arith.subf %260, %263 : vector<16x16xf32>
    %265 = math.exp %264 : vector<16x16xf32>
    %cst_92 = arith.constant dense<0.000000e+00> : vector<16xf32>
    %266 = vector.multi_reduction <add>, %265, %cst_92 [1] : vector<16x16xf32> to vector<16xf32>
    %267 = vector.shape_cast %266 : vector<16xf32> to vector<16x1xf32>
    %268 = tpu.reciprocal %267 {approx = true} : vector<16x1xf32> -> vector<16x1xf32>
    %269 = vector.broadcast %268 : vector<16x1xf32> to vector<16x16xf32>
    %270 = arith.mulf %265, %269 : vector<16x16xf32>
    %271 = arith.truncf %270 : vector<16x16xf32> to vector<16x16xbf16>
    %272 = arith.truncf %254 : vector<16x16xf32> to vector<16x16xbf16>
    %cst_93 = arith.constant dense<0.000000e+00> : vector<16x16xf32>
    %273 = tpu.matmul %271, %272, %cst_93 {dimension_numbers = #tpu.dot_dimension_numbers<[1], [0], [0], [1], [0, 0, 1, 1], [], []>} : vector<16x16xbf16>, vector<16x16xbf16>, vector<16x16xf32> -> vector<16x16xf32>
    %274 = arith.truncf %273 : vector<16x16xf32> to vector<16x16xbf16>
    %275 = vector.extract_strided_slice %210 {offsets = [0, 0, 0], sizes = [1, 16, 32], strides = [1, 1, 1]} : vector<2x16x32xbf16> to vector<1x16x32xbf16>
    %276 = vector.shape_cast %275 : vector<1x16x32xbf16> to vector<16x32xbf16>
    %cst_94 = arith.constant dense<0.000000e+00> : vector<16x32xf32>
    %277 = tpu.matmul %274, %276, %cst_94 {dimension_numbers = #tpu.dot_dimension_numbers<[1], [0], [0], [1], [0, 0, 1, 1], [], []>} : vector<16x16xbf16>, vector<16x32xbf16>, vector<16x32xf32> -> vector<16x32xf32>
    %278 = vector.extract_strided_slice %209 {offsets = [1, 0, 0], sizes = [1, 32, 16], strides = [1, 1, 1]} : vector<6x32x16xbf16> to vector<1x32x16xbf16>
    %279 = vector.shape_cast %278 : vector<1x32x16xbf16> to vector<32x16xbf16>
    %cst_95 = arith.constant dense<0.000000e+00> : vector<16x16xf32>
    %280 = tpu.matmul %236, %279, %cst_95 {dimension_numbers = #tpu.dot_dimension_numbers<[1], [0], [0], [1], [0, 0, 1, 1], [], []>} : vector<16x32xbf16>, vector<32x16xbf16>, vector<16x16xf32> -> vector<16x16xf32>
    %281 = vector.extract_strided_slice %0 {offsets = [20, 0], sizes = [1, 16], strides = [1, 1]} : vector<33x128xf32> to vector<1x16xf32>
    %282 = vector.broadcast %281 : vector<1x16xf32> to vector<16x16xf32>
    %283 = arith.addf %280, %282 : vector<16x16xf32>
    %284 = vector.extract_strided_slice %209 {offsets = [3, 0, 0], sizes = [1, 32, 16], strides = [1, 1, 1]} : vector<6x32x16xbf16> to vector<1x32x16xbf16>
    %285 = vector.shape_cast %284 : vector<1x32x16xbf16> to vector<32x16xbf16>
    %cst_96 = arith.constant dense<0.000000e+00> : vector<16x16xf32>
    %286 = tpu.matmul %236, %285, %cst_96 {dimension_numbers = #tpu.dot_dimension_numbers<[1], [0], [0], [1], [0, 0, 1, 1], [], []>} : vector<16x32xbf16>, vector<32x16xbf16>, vector<16x16xf32> -> vector<16x16xf32>
    %287 = vector.extract_strided_slice %0 {offsets = [22, 0], sizes = [1, 16], strides = [1, 1]} : vector<33x128xf32> to vector<1x16xf32>
    %288 = vector.broadcast %287 : vector<1x16xf32> to vector<16x16xf32>
    %289 = arith.addf %286, %288 : vector<16x16xf32>
    %290 = vector.extract_strided_slice %209 {offsets = [5, 0, 0], sizes = [1, 32, 16], strides = [1, 1, 1]} : vector<6x32x16xbf16> to vector<1x32x16xbf16>
    %291 = vector.shape_cast %290 : vector<1x32x16xbf16> to vector<32x16xbf16>
    %cst_97 = arith.constant dense<0.000000e+00> : vector<16x16xf32>
    %292 = tpu.matmul %236, %291, %cst_97 {dimension_numbers = #tpu.dot_dimension_numbers<[1], [0], [0], [1], [0, 0, 1, 1], [], []>} : vector<16x32xbf16>, vector<32x16xbf16>, vector<16x16xf32> -> vector<16x16xf32>
    %293 = vector.extract_strided_slice %0 {offsets = [24, 0], sizes = [1, 16], strides = [1, 1]} : vector<33x128xf32> to vector<1x16xf32>
    %294 = vector.broadcast %293 : vector<1x16xf32> to vector<16x16xf32>
    %295 = arith.addf %292, %294 : vector<16x16xf32>
    %cst_98 = arith.constant 2.500000e-01 : f32
    %296 = vector.broadcast %cst_98 : f32 to vector<16x16xf32>
    %297 = arith.mulf %283, %296 : vector<16x16xf32>
    %298 = arith.truncf %297 : vector<16x16xf32> to vector<16x16xbf16>
    %299 = arith.truncf %289 : vector<16x16xf32> to vector<16x16xbf16>
    %cst_99 = arith.constant dense<0.000000e+00> : vector<16x16xf32>
    %300 = tpu.matmul %298, %299, %cst_99 {dimension_numbers = #tpu.dot_dimension_numbers<[1], [1], [0], [0], [0, 0, 1, 0], [], []>} : vector<16x16xbf16>, vector<16x16xbf16>, vector<16x16xf32> -> vector<16x16xf32>
    %301 = arith.addf %300, %213 : vector<16x16xf32>
    %cst_100 = arith.constant dense<0xFF800000> : vector<16xf32>
    %302 = vector.multi_reduction <maximumf>, %301, %cst_100 [1] : vector<16x16xf32> to vector<16xf32>
    %303 = vector.shape_cast %302 : vector<16xf32> to vector<16x1xf32>
    %304 = vector.broadcast %303 : vector<16x1xf32> to vector<16x16xf32>
    %305 = arith.subf %301, %304 : vector<16x16xf32>
    %306 = math.exp %305 : vector<16x16xf32>
    %cst_101 = arith.constant dense<0.000000e+00> : vector<16xf32>
    %307 = vector.multi_reduction <add>, %306, %cst_101 [1] : vector<16x16xf32> to vector<16xf32>
    %308 = vector.shape_cast %307 : vector<16xf32> to vector<16x1xf32>
    %309 = tpu.reciprocal %308 {approx = true} : vector<16x1xf32> -> vector<16x1xf32>
    %310 = vector.broadcast %309 : vector<16x1xf32> to vector<16x16xf32>
    %311 = arith.mulf %306, %310 : vector<16x16xf32>
    %312 = arith.truncf %311 : vector<16x16xf32> to vector<16x16xbf16>
    %313 = arith.truncf %295 : vector<16x16xf32> to vector<16x16xbf16>
    %cst_102 = arith.constant dense<0.000000e+00> : vector<16x16xf32>
    %314 = tpu.matmul %312, %313, %cst_102 {dimension_numbers = #tpu.dot_dimension_numbers<[1], [0], [0], [1], [0, 0, 1, 1], [], []>} : vector<16x16xbf16>, vector<16x16xbf16>, vector<16x16xf32> -> vector<16x16xf32>
    %315 = arith.truncf %314 : vector<16x16xf32> to vector<16x16xbf16>
    %316 = vector.extract_strided_slice %210 {offsets = [1, 0, 0], sizes = [1, 16, 32], strides = [1, 1, 1]} : vector<2x16x32xbf16> to vector<1x16x32xbf16>
    %317 = vector.shape_cast %316 : vector<1x16x32xbf16> to vector<16x32xbf16>
    %cst_103 = arith.constant dense<0.000000e+00> : vector<16x32xf32>
    %318 = tpu.matmul %315, %317, %cst_103 {dimension_numbers = #tpu.dot_dimension_numbers<[1], [0], [0], [1], [0, 0, 1, 1], [], []>} : vector<16x16xbf16>, vector<16x32xbf16>, vector<16x32xf32> -> vector<16x32xf32>
    %319 = arith.addf %277, %318 : vector<16x32xf32>
    %320 = arith.addf %208, %319 : vector<16x32xf32>
    %321 = vector.extract_strided_slice %0 {offsets = [25, 0], sizes = [1, 32], strides = [1, 1]} : vector<33x128xf32> to vector<1x32xf32>
    %322 = vector.broadcast %321 : vector<1x32xf32> to vector<16x32xf32>
    %323 = arith.addf %320, %322 : vector<16x32xf32>
    %324 = vector.extract_strided_slice %0 {offsets = [26, 0], sizes = [1, 32], strides = [1, 1]} : vector<33x128xf32> to vector<1x32xf32>
    %325 = vector.extract_strided_slice %0 {offsets = [27, 0], sizes = [1, 32], strides = [1, 1]} : vector<33x128xf32> to vector<1x32xf32>
    %cst_104 = arith.constant dense<0.000000e+00> : vector<16xf32>
    %326 = vector.multi_reduction <add>, %323, %cst_104 [1] : vector<16x32xf32> to vector<16xf32>
    %327 = vector.shape_cast %326 : vector<16xf32> to vector<16x1xf32>
    %cst_105 = arith.constant 3.200000e+01 : f32
    %328 = vector.broadcast %cst_105 : f32 to vector<16x1xf32>
    %329 = arith.divf %327, %328 : vector<16x1xf32>
    %330 = vector.broadcast %329 : vector<16x1xf32> to vector<16x32xf32>
    %331 = arith.subf %323, %330 : vector<16x32xf32>
    %332 = arith.mulf %331, %331 : vector<16x32xf32>
    %cst_106 = arith.constant dense<0.000000e+00> : vector<16xf32>
    %333 = vector.multi_reduction <add>, %332, %cst_106 [1] : vector<16x32xf32> to vector<16xf32>
    %334 = vector.shape_cast %333 : vector<16xf32> to vector<16x1xf32>
    %cst_107 = arith.constant 3.200000e+01 : f32
    %335 = vector.broadcast %cst_107 : f32 to vector<16x1xf32>
    %336 = arith.divf %334, %335 : vector<16x1xf32>
    %cst_108 = arith.constant 9.99999974E-6 : f32
    %337 = vector.broadcast %cst_108 : f32 to vector<16x1xf32>
    %338 = arith.addf %336, %337 : vector<16x1xf32>
    %339 = math.rsqrt %338 : vector<16x1xf32>
    %340 = vector.broadcast %339 : vector<16x1xf32> to vector<16x32xf32>
    %341 = arith.mulf %331, %340 : vector<16x32xf32>
    %342 = vector.broadcast %324 : vector<1x32xf32> to vector<16x32xf32>
    %343 = arith.mulf %341, %342 : vector<16x32xf32>
    %344 = vector.broadcast %325 : vector<1x32xf32> to vector<16x32xf32>
    %345 = arith.addf %343, %344 : vector<16x32xf32>
    %346 = arith.truncf %345 : vector<16x32xf32> to vector<16x32xbf16>
    %cst_109 = arith.constant dense<0.000000e+00> : vector<16x128xf32>
    %347 = tpu.matmul %346, %211, %cst_109 {dimension_numbers = #tpu.dot_dimension_numbers<[1], [0], [0], [1], [0, 0, 1, 1], [], []>} : vector<16x32xbf16>, vector<32x128xbf16>, vector<16x128xf32> -> vector<16x128xf32>
    %348 = vector.extract_strided_slice %0 {offsets = [28, 0], sizes = [1, 128], strides = [1, 1]} : vector<33x128xf32> to vector<1x128xf32>
    %349 = vector.broadcast %348 : vector<1x128xf32> to vector<16x128xf32>
    %350 = arith.addf %347, %349 : vector<16x128xf32>
    %351 = arith.mulf %350, %350 : vector<16x128xf32>
    %352 = arith.mulf %350, %351 : vector<16x128xf32>
    %cst_110 = arith.constant 4.471500e-02 : f32
    %353 = vector.broadcast %cst_110 : f32 to vector<16x128xf32>
    %354 = arith.mulf %353, %352 : vector<16x128xf32>
    %355 = arith.addf %350, %354 : vector<16x128xf32>
    %cst_111 = arith.constant 0.797884583 : f32
    %356 = vector.broadcast %cst_111 : f32 to vector<16x128xf32>
    %357 = arith.mulf %356, %355 : vector<16x128xf32>
    %358 = math.tanh %357 : vector<16x128xf32>
    %cst_112 = arith.constant 1.000000e+00 : f32
    %359 = vector.broadcast %cst_112 : f32 to vector<16x128xf32>
    %360 = arith.addf %359, %358 : vector<16x128xf32>
    %cst_113 = arith.constant 5.000000e-01 : f32
    %361 = vector.broadcast %cst_113 : f32 to vector<16x128xf32>
    %362 = arith.mulf %361, %360 : vector<16x128xf32>
    %363 = arith.mulf %350, %362 : vector<16x128xf32>
    %364 = arith.truncf %363 : vector<16x128xf32> to vector<16x128xbf16>
    %cst_114 = arith.constant dense<0.000000e+00> : vector<16x32xf32>
    %365 = tpu.matmul %364, %212, %cst_114 {dimension_numbers = #tpu.dot_dimension_numbers<[1], [0], [0], [1], [0, 0, 1, 1], [], []>} : vector<16x128xbf16>, vector<128x32xbf16>, vector<16x32xf32> -> vector<16x32xf32>
    %366 = arith.addf %323, %365 : vector<16x32xf32>
    %367 = vector.extract_strided_slice %0 {offsets = [29, 0], sizes = [1, 32], strides = [1, 1]} : vector<33x128xf32> to vector<1x32xf32>
    %368 = vector.broadcast %367 : vector<1x32xf32> to vector<16x32xf32>
    %369 = arith.addf %366, %368 : vector<16x32xf32>
    %370 = vector.extract_strided_slice %0 {offsets = [30, 0], sizes = [1, 32], strides = [1, 1]} : vector<33x128xf32> to vector<1x32xf32>
    %371 = vector.extract_strided_slice %0 {offsets = [31, 0], sizes = [1, 32], strides = [1, 1]} : vector<33x128xf32> to vector<1x32xf32>
    %cst_115 = arith.constant dense<0.000000e+00> : vector<16xf32>
    %372 = vector.multi_reduction <add>, %369, %cst_115 [1] : vector<16x32xf32> to vector<16xf32>
    %373 = vector.shape_cast %372 : vector<16xf32> to vector<16x1xf32>
    %cst_116 = arith.constant 3.200000e+01 : f32
    %374 = vector.broadcast %cst_116 : f32 to vector<16x1xf32>
    %375 = arith.divf %373, %374 : vector<16x1xf32>
    %376 = vector.broadcast %375 : vector<16x1xf32> to vector<16x32xf32>
    %377 = arith.subf %369, %376 : vector<16x32xf32>
    %378 = arith.mulf %377, %377 : vector<16x32xf32>
    %cst_117 = arith.constant dense<0.000000e+00> : vector<16xf32>
    %379 = vector.multi_reduction <add>, %378, %cst_117 [1] : vector<16x32xf32> to vector<16xf32>
    %380 = vector.shape_cast %379 : vector<16xf32> to vector<16x1xf32>
    %cst_118 = arith.constant 3.200000e+01 : f32
    %381 = vector.broadcast %cst_118 : f32 to vector<16x1xf32>
    %382 = arith.divf %380, %381 : vector<16x1xf32>
    %cst_119 = arith.constant 9.99999974E-6 : f32
    %383 = vector.broadcast %cst_119 : f32 to vector<16x1xf32>
    %384 = arith.addf %382, %383 : vector<16x1xf32>
    %385 = math.rsqrt %384 : vector<16x1xf32>
    %386 = vector.broadcast %385 : vector<16x1xf32> to vector<16x32xf32>
    %387 = arith.mulf %377, %386 : vector<16x32xf32>
    %388 = vector.broadcast %370 : vector<1x32xf32> to vector<16x32xf32>
    %389 = arith.mulf %387, %388 : vector<16x32xf32>
    %390 = vector.broadcast %371 : vector<1x32xf32> to vector<16x32xf32>
    %391 = arith.addf %389, %390 : vector<16x32xf32>
    %cst_120 = arith.constant dense<0.000000e+00> : vector<32xf32>
    %392 = vector.multi_reduction <add>, %391, %cst_120 [0] : vector<16x32xf32> to vector<32xf32>
    %393 = vector.shape_cast %392 : vector<32xf32> to vector<1x32xf32>
    %cst_121 = arith.constant 1.600000e+01 : f32
    %394 = vector.broadcast %cst_121 : f32 to vector<1x32xf32>
    %395 = arith.divf %393, %394 : vector<1x32xf32>
    %c0_122 = arith.constant 0 : index
    %c0_123 = arith.constant 0 : index
    %c0_124 = arith.constant 0 : index
    %396 = vector.load %arg18[%c0_122, %c0_123, %c0_124] : memref<1x1x32xf32, #tpu.memory_space<vmem>>, vector<1x1x32xf32>
    %397 = vector.shape_cast %396 : vector<1x1x32xf32> to vector<1x32xf32>
    %398 = vector.shape_cast %395 : vector<1x32xf32> to vector<1x1x32xf32>
    tpu.vector_store %arg18[%c0_122, %c0_123, %c0_124], %398 {strides = array<i32>} : memref<1x1x32xf32, #tpu.memory_space<vmem>>, vector<1x1x32xf32>,
    return
  }
  func.func @transform_0(%arg0: i32) -> (i32, i32, i32) {
    %c0_i32 = arith.constant 0 : i32
    %c0_i32_0 = arith.constant 0 : i32
    %c0_i32_1 = arith.constant 0 : i32
    return %arg0, %c0_i32, %c0_i32_0 : i32, i32, i32
  }
  func.func @transform_1(%arg0: i32) -> (i32, i32) {
    %c0_i32 = arith.constant 0 : i32
    %c0_i32_0 = arith.constant 0 : i32
    %c0_i32_1 = arith.constant 0 : i32
    return %c0_i32, %c0_i32_0 : i32, i32
  }
  func.func @transform_2(%arg0: i32) -> (i32, i32) {
    %c0_i32 = arith.constant 0 : i32
    %c0_i32_0 = arith.constant 0 : i32
    %c0_i32_1 = arith.constant 0 : i32
    return %c0_i32, %c0_i32_0 : i32, i32
  }
  func.func @transform_3(%arg0: i32) -> (i32, i32) {
    %c0_i32 = arith.constant 0 : i32
    %c0_i32_0 = arith.constant 0 : i32
    %c0_i32_1 = arith.constant 0 : i32
    return %c0_i32, %c0_i32_0 : i32, i32
  }
  func.func @transform_4(%arg0: i32) -> (i32, i32) {
    %c0_i32 = arith.constant 0 : i32
    %c0_i32_0 = arith.constant 0 : i32
    %c0_i32_1 = arith.constant 0 : i32
    return %c0_i32, %c0_i32_0 : i32, i32
  }
  func.func @transform_5(%arg0: i32) -> (i32, i32, i32) {
    %c0_i32 = arith.constant 0 : i32
    %c0_i32_0 = arith.constant 0 : i32
    %c0_i32_1 = arith.constant 0 : i32
    %c0_i32_2 = arith.constant 0 : i32
    return %c0_i32, %c0_i32_0, %c0_i32_1 : i32, i32, i32
  }
  func.func @transform_6(%arg0: i32) -> (i32, i32, i32) {
    %c0_i32 = arith.constant 0 : i32
    %c0_i32_0 = arith.constant 0 : i32
    %c0_i32_1 = arith.constant 0 : i32
    %c0_i32_2 = arith.constant 0 : i32
    return %c0_i32, %c0_i32_0, %c0_i32_1 : i32, i32, i32
  }
  func.func @transform_7(%arg0: i32) -> (i32, i32) {
    %c0_i32 = arith.constant 0 : i32
    %c0_i32_0 = arith.constant 0 : i32
    %c0_i32_1 = arith.constant 0 : i32
    return %c0_i32, %c0_i32_0 : i32, i32
  }
  func.func @transform_8(%arg0: i32) -> (i32, i32) {
    %c0_i32 = arith.constant 0 : i32
    %c0_i32_0 = arith.constant 0 : i32
    %c0_i32_1 = arith.constant 0 : i32
    return %c0_i32, %c0_i32_0 : i32, i32
  }
  func.func @transform_9(%arg0: i32) -> (i32, i32) {
    %c0_i32 = arith.constant 0 : i32
    %c0_i32_0 = arith.constant 0 : i32
    %c0_i32_1 = arith.constant 0 : i32
    return %c0_i32, %c0_i32_0 : i32, i32
  }
  func.func @transform_10(%arg0: i32) -> (i32, i32) {
    %c0_i32 = arith.constant 0 : i32
    %c0_i32_0 = arith.constant 0 : i32
    %c0_i32_1 = arith.constant 0 : i32
    return %c0_i32, %c0_i32_0 : i32, i32
  }
  func.func @transform_11(%arg0: i32) -> (i32, i32) {
    %c0_i32 = arith.constant 0 : i32
    %c0_i32_0 = arith.constant 0 : i32
    %c0_i32_1 = arith.constant 0 : i32
    return %c0_i32, %c0_i32_0 : i32, i32
  }
  func.func @transform_12(%arg0: i32) -> (i32, i32, i32) {
    %c0_i32 = arith.constant 0 : i32
    %c0_i32_0 = arith.constant 0 : i32
    %c0_i32_1 = arith.constant 0 : i32
    %c0_i32_2 = arith.constant 0 : i32
    return %c0_i32, %c0_i32_0, %c0_i32_1 : i32, i32, i32
  }
  func.func @transform_13(%arg0: i32) -> (i32, i32, i32) {
    %c0_i32 = arith.constant 0 : i32
    %c0_i32_0 = arith.constant 0 : i32
    %c0_i32_1 = arith.constant 0 : i32
    %c0_i32_2 = arith.constant 0 : i32
    return %c0_i32, %c0_i32_0, %c0_i32_1 : i32, i32, i32
  }
  func.func @transform_14(%arg0: i32) -> (i32, i32) {
    %c0_i32 = arith.constant 0 : i32
    %c0_i32_0 = arith.constant 0 : i32
    %c0_i32_1 = arith.constant 0 : i32
    return %c0_i32, %c0_i32_0 : i32, i32
  }
  func.func @transform_15(%arg0: i32) -> (i32, i32) {
    %c0_i32 = arith.constant 0 : i32
    %c0_i32_0 = arith.constant 0 : i32
    %c0_i32_1 = arith.constant 0 : i32
    return %c0_i32, %c0_i32_0 : i32, i32
  }
  func.func @transform_16(%arg0: i32) -> (i32, i32, i32) {
    %c0_i32 = arith.constant 0 : i32
    %c0_i32_0 = arith.constant 0 : i32
    %c0_i32_1 = arith.constant 0 : i32
    return %arg0, %c0_i32, %c0_i32_0 : i32, i32, i32
  }
  func.func @transform_17(%arg0: i32) -> (i32, i32, i32) {
    %c0_i32 = arith.constant 0 : i32
    %c0_i32_0 = arith.constant 0 : i32
    %c0_i32_1 = arith.constant 0 : i32
    return %arg0, %c0_i32, %c0_i32_0 : i32, i32, i32
  }
}

</mosaic_0001>

<bundles_post_ra>
// kernel: loc_net_forward.1
= control target key start
LH: loop header
LB: loop body
LE: loop exit
PB: predicated region body
PF: predicated region fallthrough
CT: control target
= control target key end

     0   :  { %s3699_s24 = smov 0   ;;  %s4311_s0 = inlined_call_operand.vmem [shape: f32[2,16,48], index: 0, kind: input, shape index: {}]   ;;  %s4312_s1 = inlined_call_operand.vmem [shape: f32[16,16], index: 1, kind: input, shape index: {}]   ;;  %s4313_s2 = inlined_call_operand.vmem [shape: f32[33,128], index: 2, kind: input, shape index: {}]   ;;  %s4314_s3 = inlined_call_operand.vmem [shape: f32[16,32], index: 3, kind: input, shape index: {}]   ;;  %s4315_s4 = inlined_call_operand.vmem [shape: bf16[48,32], index: 4, kind: input, shape index: {}]   ;;  %s4316_s5 = inlined_call_operand.vmem [shape: bf16[6,32,16], index: 5, kind: input, shape index: {}]   ;;  %s4317_s6 = inlined_call_operand.vmem [shape: bf16[2,16,32], index: 6, kind: input, shape index: {}]   ;;  %s4318_s7 = inlined_call_operand.vmem [shape: bf16[32,128], index: 7, kind: input, shape index: {}]   ;;  %s4319_s8 = inlined_call_operand.vmem [shape: bf16[128,32], index: 8, kind: input, shape index: {}]   ;;  %s4320_s9 = inlined_call_operand.vmem [shape: bf16[32,32], index: 9, kind: input, shape index: {}]   ;;  %s4321_s10 = inlined_call_operand.vmem [shape: bf16[48,32], index: 10, kind: input, shape index: {}]   ;;  %s4322_s11 = inlined_call_operand.vmem [shape: bf16[32,32], index: 11, kind: input, shape index: {}]   ;;  %s4323_s12 = inlined_call_operand.vmem [shape: bf16[6,32,16], index: 12, kind: input, shape index: {}]   ;;  %s4324_s13 = inlined_call_operand.vmem [shape: bf16[2,16,32], index: 13, kind: input, shape index: {}]   ;;  %s4325_s14 = inlined_call_operand.vmem [shape: bf16[32,128], index: 14, kind: input, shape index: {}]   ;;  %s4326_s15 = inlined_call_operand.vmem [shape: bf16[128,32], index: 15, kind: input, shape index: {}]   ;;  %s4327_s16 = inlined_call_operand.vmem [shape: f32[2,16,32], index: 16, kind: output, shape index: {0}]   ;;  %s4328_s17 = inlined_call_operand.vmem [shape: f32[2,1,32], index: 17, kind: output, shape index: {1}]  }
   0x1   :  { %4330 = sst [smem:[#allocation2_spill]] %s4311_s0 }
   0x2   :  { %4331 = sst [smem:[#allocation3_spill]] %s4312_s1 }
   0x3 LB: > { %s3007_s25 = sadd.s32 4294967295, %s3605_s24   ;;  %p3011_p0 = scmp.ge.s32.totalorder %s3605_s24, 1  ;;  %s3605_s24 = sphi %s3699_s24, %s28_s24  }
   0x4   : > { %p490_p1 = scmp.lt.s32.totalorder %s3605_s24, 3 }
   0x6   : > { %p491_p2 = pnand %p3011_p0, %p490_p1 }
   0x7   : > { %p545_p3 = scmp.lt.s32.totalorder (!%p491_p2), %s3007_s25, 1  ;;  %s4332_s20 = sld [smem:[#allocation2_spill]] (!%p491_p2) }
   0x8   : > { %494 = sbr.rel (%p491_p2) target bundleno = 7085 (0x1bad), region = 84  ;;  %s4333_s22 = sld [smem:[#allocation3_spill]] (!%p491_p2) }
   0xd   : > { %v3477_v0 = vld [vmem:[%s4315_s4 + $0x10] sm:$0xff]   ;;  %v3607_v1 = vmov 0.0   ;;  %v3478_v2 = vld [vmem:[%s4315_s4 + $0x8] sm:$0xff]   ;;  %vm3608_vm0 = vmmov 0   ;;  %s4335_s25 = smov (!%p545_p3, %s3007_s25), 1  ;;  %v3479_v3 = vld [vmem:[%s4315_s4] sm:$0xff]   ;;  %v573_v7 = vlaneseq }
   0xe   : > { %3207 = vmatprep.subr.bf16.mxu0 %v3607_v1  ;;  %3225 = vmatprep.subr.bf16.mxu1 %v3607_v1  ;;  %s3107_s18 = sshll.u32 %s4335_s25, 4  ;;  %vm595_vm1 = vcmask 392192   ;;  %v3747_v10 = vld [vmem:[%s4313_s2] sm:$0xff]  ;;  %vm692_vm2 = vcmask 261120   ;;  %v641_v18 = vld [vmem:[%s4314_s3 + $0x8] sm:$0xff]  ;;  %vm911_vm3 = vcmask 130048  }
   0xf   : > { %3208 = vmatpush3.bf16.msra.mxu0 %v3477_v0  ;;  %3213 = vmatprep.mubr.msk.bf16.mxu0 %vm3608_vm0, %v3607_v1  ;;  %s549_s21 = scalar_lea.vmem %s4332_s20, %s3107_s18  ;;  %v3739_v8 = vshrl.u32 %v573_v7, 7  ;;  %v640_v13 = vld [vmem:[%s4314_s3] sm:$0xff]  ;;  %v3480_v34 = vld [vmem:[%s4316_s5 + $0x8] sm:$0xff]   ;;  %s554_s19 = scalar_lea.vmem %s4327_s16, %s3107_s18  ;;  %vm2925_vm4 = vcmask 253952  }
  0x10   : > { %3209 = vmatprep.subr.bf16.mxu0 %v3607_v1  ;;  %3229 = vmatprep.mubr.msk.bf16.mxu1 %vm3608_vm0, %v3607_v1  ;;  %v564_v4 = vld [vmem:[%s549_s21] sm:$0xff]  ;;  %v565_v5 = vld [vmem:[%s549_s21 + $0x8] sm:$0xff]  ;;  %s557_s21 = scalar_lea.vmem %s4328_s17, %s4335_s25 }
  0x11   : > { %v3732_v6 = vpack.c.bf16 %v565_v5, %v564_v4  ;;  %v3742_v9 = vsub.s32 0, %v3739_v8  ;;  %v3481_v35 = vld [vmem:[%s4316_s5 + $0x28] sm:$0xff]   ;;  %v3482_v36 = vld [vmem:[%s4316_s5] sm:$0xff]   ;;  %v3786_v44 = vsub.s32 1, %v3739_v8  ;;  %v3791_v48 = vsub.s32 2, %v3739_v8 }
  0x12   : > { %3226 = vmatpush3.bf16.msra.mxu1 %v3481_v35  ;;  %v3483_v37 = vld [vmem:[%s4316_s5 + $0x20] sm:$0xff]   ;;  %v3484_v56 = vld [vmem:[%s4316_s5 + $0x48] sm:$0xff]   ;;  %v3818_v59 = vsub.s32 5, %v3739_v8  ;;  %v3821_v62 = vsub.s32 3, %v3739_v8  ;;  %v3489_v35 = vld [vmem:[%s4316_s5 + $0x50] sm:$0xff]  }
  0x13   : > { %3210 = vmatpush3.bf16.msra.mxu0 %v3478_v2  ;;  %v576_v11 = vrot.slane %v3747_v10, %v3742_v9  ;;  %3227 = vmatprep.subr.bf16.mxu1 %v3607_v1  ;;  %v723_v46 = vrot.slane %v3747_v10, %v3786_v44  ;;  %v729_v52 = vrot.slane %v3747_v10, %v3791_v48  ;;  %v3485_v58 = vld [vmem:[%s4316_s5 + $0x40] sm:$0xff]  }
  0x14   : > { %3211 = vmatprep.subr.bf16.mxu0 %v3607_v1  ;;  %v796_v63 = vrot.slane %v3747_v10, %v3818_v59  ;;  %v736_v5 = vrot.slane %v3747_v10, %v3821_v62 }
  0x16   : > { %3228 = vmatpush3.bf16.msra.mxu1 %v3483_v37 }
  0x17   : > { %3212 = vmatpush3.bf16.msra.mxu0 %v3479_v3  ;;  %3241 = vmatprep.subr.bf16.mxu1 %v3607_v1 }
  0x18   : > { %3217 = vmatprep.subr.bf16.mxu0 %v3607_v1 }
  0x1a   : > { %3214 = vmatmul.mubr.msk.bf16.vlgmr.msra.gmra.mxu0 %vm595_vm1, %v3732_v6 }
  0x1b   : > { %3221 = vmatprep.mubr.msk.bf16.mxu0 %vm3608_vm0, %v3607_v1  ;;  %3218 = vmatpush3.bf16.msra.mxu0 %v3480_v34  ;;  %v3488_v34 = vld [vmem:[%s4316_s5 + $0x58] sm:$0xff]  }
  0x1c   : > { %3219 = vmatprep.subr.bf16.mxu0 %v3607_v1 }
  0x1f   : > { %3220 = vmatpush3.bf16.msra.mxu0 %v3482_v36 }
  0x20   : > { %3233 = vmatprep.subr.bf16.mxu0 %v3607_v1 }
  0xda   : > { %v633_v12 = vpop.f32.mrf.mxu0 }
  0xdb   : > { %v634_v14 = vadd.f32 %v633_v12, %v576_v11  ;;  %v3828_v12 = vsub.s32 7, %v3739_v8 }
  0xdc   : > { %v3215_v15 = vpop.f32.mrf.mxu0 }
  0xdd   : > { %v3754_v16 = vadd.f32 %v640_v13, %v634_v14 }
  0xde   : > { %v636_v17 = vpop.f32.mrf.mxu0 }
  0xdf   : > { %v637_v19 = vadd.f32 %v636_v17, %v576_v11  ;;  %v693_v20 = vsel %vm692_vm2, %v3754_v16, 0.0 }
  0xe0   : > { %694 = vadd.xlane.f32.xlu0 %v693_v20  ;;  %v3216_v21 = vpop.f32.mrf.mxu0  ;;  %v853_v20 = vrot.slane %v3747_v10, %v3828_v12 }
  0xe1   : > { %v3761_v22 = vadd.f32 %v641_v18, %v637_v19 }
  0xe3   : > { %v696_v23 = vsel %vm692_vm2, %v3761_v22, 0.0 }
  0xe4   : > { %697 = vadd.xlane.f32.xlu0 %v696_v23 }
 0x169   : > { %v695_v24 = vpop.xlane.xlu0 %694 }
 0x16a   : > { %v700_v25 = vmul.f32 0.03125, %v695_v24 }
 0x16c   : > { %v702_v26 = vsub.f32 %v3754_v16, %v700_v25 }
 0x16d   : > { %v698_v27 = vpop.xlane.xlu0 %697 }
 0x16e   : > { %v701_v28 = vmul.f32 0.03125, %v698_v27  ;;  %v704_v29 = vmul.f32 %v702_v26, %v702_v26 }
 0x170   : > { %v703_v30 = vsub.f32 %v3761_v22, %v701_v28  ;;  %v706_v31 = vsel %vm692_vm2, %v704_v29, 0.0 }
 0x171   : > { %707 = vadd.xlane.f32.xlu1 %v706_v31 }
 0x172   : > { %v705_v32 = vmul.f32 %v703_v30, %v703_v30 }
 0x174   : > { %v709_v33 = vsel %vm692_vm2, %v705_v32, 0.0 }
 0x175   : > { %710 = vadd.xlane.f32.xlu1 %v709_v33  ;;  %v3487_v33 = vld [vmem:[%s4316_s5 + $0x10] sm:$0xff]  }
 0x1fa   : > { %v708_v38 = vpop.xlane.xlu1 %707 }
 0x1fb   : > { %v712_v39 = vmul.f32 0.03125, %v708_v38 }
 0x1fd   : > { %v714_v40 = vadd.f32 1e-05, %v712_v39  ;;  %v3864_v39 = vsub.s32 4, %v3739_v8 }
 0x1fe   : > { %v711_v41 = vpop.xlane.xlu1 %710 }
 0x1ff   : > { %3535 = vrsqrt.f32 %v714_v40  ;;  %v713_v42 = vmul.f32 0.03125, %v711_v41 }
 0x201   : > { %v715_v43 = vadd.f32 1e-05, %v713_v42 }
 0x203   : > { %3537 = vrsqrt.f32 %v715_v43  ;;  %v1031_v43 = vrot.slane %v3747_v10, %v3864_v39 }
 0x20c   : > { %v3536_v45 = vpop.eup %3535 }
 0x20d   : > { %v718_v47 = vmul.f32 %v3536_v45, %v702_v26 }
 0x20f   : > { %v724_v50 = vmul.f32 %v723_v46, %v718_v47 }
 0x210   : > { %v3538_v49 = vpop.eup %3537 }
 0x211   : > { %v719_v51 = vmul.f32 %v3538_v49, %v703_v30  ;;  %v730_v54 = vadd.f32 %v729_v52, %v724_v50  ;;  %v3486_v30 = vld [vmem:[%s4316_s5 + $0x18] sm:$0xff]  }
 0x213   : > { %v725_v53 = vmul.f32 %v723_v46, %v719_v51 }
 0x215   : > { %v731_v55 = vadd.f32 %v729_v52, %v725_v53  ;;  %v3872_v52 = vld [vmem:[%s4313_s2 + $0x8] sm:$0xff] }
 0x217   : > { %v3798_v57 = vpack.c.bf16 %v731_v55, %v730_v54 }
 0x219   : > { %3222 = vmatmul.mubr.msk.bf16.vlgmr.msra.gmra.mxu0 %vm692_vm2, %v3798_v57  ;;  %3230 = vmatmul.mubr.msk.bf16.vlgmr.msra.gmra.mxu1 %vm692_vm2, %v3798_v57 }
 0x21a   : > { %3234 = vmatpush3.bf16.msra.mxu0 %v3484_v56  ;;  %3237 = vmatprep.mubr.msk.bf16.mxu0 %vm3608_vm0, %v3607_v1 }
 0x21b   : > { %3235 = vmatprep.subr.bf16.mxu0 %v3607_v1  ;;  %3243 = vmatprep.mubr.msk.bf16.mxu1 %vm3608_vm0, %v3607_v1 }
 0x21e   : > { %3236 = vmatpush3.bf16.msra.mxu0 %v3485_v58  ;;  %v1145_v58 = vrot.slane %v3872_v52, %v3742_v9 }
 0x21f   : > { %3247 = vmatprep.subr.bf16.mxu0 %v3607_v1 }
 0x221   : > { %3238 = vmatmul.mubr.msk.bf16.vlgmr.msra.gmra.mxu0 %vm692_vm2, %v3798_v57 }
 0x222   : > { %3249 = vmatprep.mubr.msk.bf16.mxu0 %vm3608_vm0, %v3607_v1 }
 0x2d9   : > { %v786_v60 = vpop.f32.mrf.mxu0  ;;  %v843_v61 = vpop.f32.mrf.mxu1 }
 0x2da   : > { %v844_v7 = vadd.f32 %v843_v61, %v796_v63  ;;  %v787_v19 = vadd.f32 %v786_v60, %v736_v5 }
 0x2db   : > { %v3223_v0 = vpop.f32.mrf.mxu0  ;;  %v3231_v2 = vpop.f32.mrf.mxu1 }
 0x2dc   : > { %v907_v26 = vmul.f32 0.25, %v787_v19 }
 0x2dd   : > { %v789_v3 = vpop.f32.mrf.mxu0  ;;  %v846_v4 = vpop.f32.mrf.mxu1 }
 0x2de   : > { %v847_v11 = vadd.f32 %v846_v4, %v796_v63  ;;  %v790_v15 = vadd.f32 %v789_v3, %v736_v5 }
 0x2df   : > { %v3224_v13 = vpop.f32.mrf.mxu0  ;;  %v3232_v14 = vpop.f32.mrf.mxu1 }
 0x2e0   : > { %v910_v17 = vpack.c.bf16 %v847_v11, %v844_v7  ;;  %v908_v24 = vmul.f32 0.25, %v790_v15 }
 0x2e1   : > { %v900_v18 = vpop.f32.mrf.mxu0 }
 0x2e2   : > { %v916_v21 = vsel %vm911_vm3, %v910_v17, 0  ;;  %v901_v27 = vadd.f32 %v900_v18, %v853_v20  ;;  %v909_v31 = vpack.c.bf16 %v908_v24, %v907_v26 }
 0x2e3   : > { %v3239_v23 = vpop.f32.mrf.mxu0  ;;  %3242 = vmatpush3.bf16.xpose.msra.mxu1 %v916_v21 }
 0x2e4   : > { %3253 = vmatprep.subr.bf16.mxu1 %v3607_v1 }
 0x2e5   : > { %v903_v25 = vpop.f32.mrf.mxu0 }
 0x2e6   : > { %v904_v28 = vadd.f32 %v903_v25, %v853_v20 }
 0x2e7   : > { %v3240_v29 = vpop.f32.mrf.mxu0 }
 0x2e8   : > { %v982_v32 = vpack.c.bf16 %v904_v28, %v901_v27  ;;  %v3490_v27 = vld [vmem:[%s4316_s5 + $0x38] sm:$0xff]   ;;  %v3491_v29 = vld [vmem:[%s4316_s5 + $0x30] sm:$0xff]  }
 0x2ea   : > { %3244 = vmatmul.mubr.msk.bf16.vlgmr.msra.gmra.mxu1 %vm911_vm3, %v909_v31  ;;  %3248 = vmatpush3.bf16.msra.mxu0 %v982_v32 }
 0x2eb   : > { %3254 = vmatpush3.bf16.msra.mxu1 %v3486_v30  ;;  %3257 = vmatprep.mubr.msk.bf16.mxu1 %vm3608_vm0, %v3607_v1 }
 0x2ec   : > { %3255 = vmatprep.subr.bf16.mxu1 %v3607_v1  ;;  %3261 = vmatprep.subr.bf16.mxu0 %v3607_v1 }
 0x2ef   : > { %3256 = vmatpush3.bf16.msra.mxu1 %v3487_v33 }
 0x2f0   : > { %3269 = vmatprep.subr.bf16.mxu1 %v3607_v1 }
 0x2f2   : > { %3258 = vmatmul.mubr.msk.bf16.vlgmr.msra.gmra.mxu1 %vm692_vm2, %v3798_v57 }
 0x2f3   : > { %3270 = vmatpush3.bf16.msra.mxu1 %v3488_v34  ;;  %3273 = vmatprep.mubr.msk.bf16.mxu1 %vm3608_vm0, %v3607_v1  ;;  %v3901_v34 = vsub.s32 6, %v3739_v8 }
 0x2f4   : > { %3271 = vmatprep.subr.bf16.mxu1 %v3607_v1 }
 0x2f7   : > { %3272 = vmatpush3.bf16.msra.mxu1 %v3489_v35 }
 0x2f8   : > { %3283 = vmatprep.subr.bf16.mxu1 %v3607_v1 }
 0x2fa   : > { %3274 = vmatmul.mubr.msk.bf16.vlgmr.msra.gmra.mxu1 %vm692_vm2, %v3798_v57 }
 0x2fb   : > { %3285 = vmatprep.mubr.msk.bf16.mxu1 %vm3608_vm0, %v3607_v1 }
 0x3aa   : > { %v952_v36 = vpop.f32.mrf.mxu1 }
 0x3ab   : > { %v959_v37 = vsel %vm911_vm3, %v952_v36, -inf }
 0x3ac   : > { %960 = vmax.xlane.f32.xlu0 %v959_v37  ;;  %v3245_v38 = vpop.f32.mrf.mxu1  ;;  %v1088_v37 = vrot.slane %v3747_v10, %v3901_v34 }
 0x3ae   : > { %v955_v40 = vpop.f32.mrf.mxu1 }
 0x3af   : > { %v962_v41 = vsel %vm911_vm3, %v955_v40, -inf }
 0x3b0   : > { %963 = vmax.xlane.f32.xlu1 %v962_v41  ;;  %v3246_v42 = vpop.f32.mrf.mxu1 }
 0x3b2   : > { %v1078_v45 = vpop.f32.mrf.mxu1 }
 0x3b3   : > { %v1079_v47 = vadd.f32 %v1078_v45, %v1031_v43 }
 0x3b4   : > { %v3259_v46 = vpop.f32.mrf.mxu1 }
 0x3b5   : > { %v3874_v53 = vmul.f32 0.25, %v1079_v47 }
 0x3b6   : > { %v1081_v49 = vpop.f32.mrf.mxu1 }
 0x3b7   : > { %v1082_v50 = vadd.f32 %v1081_v49, %v1031_v43 }
 0x3b8   : > { %v3260_v51 = vpop.f32.mrf.mxu1 }
 0x3b9   : > { %v3876_v54 = vmul.f32 0.25, %v1082_v50 }
 0x3ba   : > { %v1192_v55 = vpop.f32.mrf.mxu1 }
 0x3bb   : > { %v1201_v56 = vpack.c.bf16 %v3876_v54, %v3874_v53  ;;  %v1193_v63 = vadd.f32 %v1192_v55, %v1145_v58 }
 0x3bc   : > { %v3275_v60 = vpop.f32.mrf.mxu1 }
 0x3be   : > { %v1195_v61 = vpop.f32.mrf.mxu1 }
 0x3bf   : > { %v1196_v0 = vadd.f32 %v1195_v61, %v1145_v58 }
 0x3c0   : > { %v3276_v2 = vpop.f32.mrf.mxu1 }
 0x3c1   : > { %v1273_v3 = vpack.c.bf16 %v1196_v0, %v1193_v63 }
 0x3c3   : > { %3284 = vmatpush3.bf16.msra.mxu1 %v1273_v3 }
 0x3c4   : > { %3295 = vmatprep.subr.bf16.mxu1 %v3607_v1 }
 0x435   : > { %v961_v4 = vpop.xlane.xlu0 %960 }
 0x436   : > { %v965_v5 = vsub.f32 %v952_v36, %v961_v4 }
 0x438   : > { %v967_v7 = vmul.f32 1.442695, %v965_v5 }
 0x439   : > { %v964_v11 = vpop.xlane.xlu1 %963 }
 0x43a   : > { %3539 = vpow2.f32 %v967_v7  ;;  %v966_v13 = vsub.f32 %v955_v40, %v964_v11 }
 0x43c   : > { %v969_v14 = vmul.f32 1.442695, %v966_v13  ;;  %v3492_v13 = vld [vmem:[%s4317_s6] sm:$0xff]  }
 0x43e   : > { %3541 = vpow2.f32 %v969_v14 }
 0x447   : > { %v3540_v15 = vpop.eup %3539 }
 0x448   : > { %v971_v17 = vsel %vm911_vm3, %v3540_v15, 0.0 }
 0x449   : > { %972 = vadd.xlane.f32.xlu0 %v971_v17 }
 0x44b   : > { %v3542_v18 = vpop.eup %3541 }
 0x44c   : > { %v974_v19 = vsel %vm911_vm3, %v3542_v18, 0.0 }
 0x44d   : > { %975 = vadd.xlane.f32.xlu1 %v974_v19 }
 0x4d2   : > { %v973_v20 = vpop.xlane.xlu0 %972 }
 0x4d3   : > { %3543 = vrcp.f32 %v973_v20 }
 0x4d6   : > { %v976_v21 = vpop.xlane.xlu1 %975 }
 0x4d7   : > { %3545 = vrcp.f32 %v976_v21 }
 0x4e0   : > { %v3544_v23 = vpop.eup %3543 }
 0x4e1   : > { %v979_v25 = vmul.f32 %v3544_v23, %v3540_v15  ;;  %v3493_v15 = vld [vmem:[%s4317_s6 + $0x8] sm:$0xff]  }
 0x4e4   : > { %v3546_v24 = vpop.eup %3545 }
 0x4e5   : > { %v980_v26 = vmul.f32 %v3546_v24, %v3542_v18 }
 0x4e7   : > { %v981_v28 = vpack.c.bf16 %v980_v26, %v979_v25 }
 0x4e9   : > { %3250 = vmatmul.mubr.msk.bf16.vlgmr.msra.gmra.mxu0 %vm911_vm3, %v981_v28 }
 0x4ea   : > { %3262 = vmatpush3.bf16.msra.mxu0 %v3490_v27  ;;  %3265 = vmatprep.mubr.msk.bf16.mxu0 %vm3608_vm0, %v3607_v1 }
 0x4eb   : > { %3263 = vmatprep.subr.bf16.mxu0 %v3607_v1 }
 0x4ee   : > { %3264 = vmatpush3.bf16.msra.mxu0 %v3491_v29  ;;  %v1424_v29 = vrot.slane %v3872_v52, %v3786_v44 }
 0x4ef   : > { %3277 = vmatprep.subr.bf16.mxu0 %v3607_v1 }
 0x4f1   : > { %3266 = vmatmul.mubr.msk.bf16.vlgmr.msra.gmra.mxu0 %vm692_vm2, %v3798_v57 }
 0x4f2   : > { %3279 = vmatprep.mubr.msk.bf16.mxu0 %vm3608_vm0, %v3607_v1 }
 0x5a9   : > { %v1020_v30 = vpop.f32.mrf.mxu0 }
 0x5ab   : > { %v3251_v31 = vpop.f32.mrf.mxu0 }
 0x5ad   : > { %v1023_v32 = vpop.f32.mrf.mxu0 }
 0x5ae   : > { %v1027_v33 = vpack.c.bf16 %v1023_v32, %v1020_v30 }
 0x5af   : > { %v3252_v35 = vpop.f32.mrf.mxu0 }
 0x5b1   : > { %v1135_v36 = vpop.f32.mrf.mxu0 }
 0x5b2   : > { %v1136_v41 = vadd.f32 %v1135_v36, %v1088_v37 }
 0x5b3   : > { %v3267_v38 = vpop.f32.mrf.mxu0 }
 0x5b5   : > { %v1138_v40 = vpop.f32.mrf.mxu0 }
 0x5b6   : > { %v1139_v42 = vadd.f32 %v1138_v40, %v1088_v37 }
 0x5b7   : > { %v3268_v57 = vpop.f32.mrf.mxu0 }
 0x5b8   : > { %v1202_v43 = vpack.c.bf16 %v1139_v42, %v1136_v41 }
 0x5ba   : > { %v1207_v45 = vsel %vm911_vm3, %v1202_v43, 0 }
 0x5bb   : > { %3278 = vmatpush3.bf16.xpose.msra.mxu0 %v1207_v45 }
 0x5bc   : > { %3289 = vmatprep.subr.bf16.mxu0 %v3607_v1 }
 0x5c2   : > { %3280 = vmatmul.mubr.msk.bf16.vlgmr.msra.gmra.mxu0 %vm911_vm3, %v1201_v56 }
 0x5c3   : > { %3291 = vmatprep.mubr.msk.bf16.mxu0 %vm3608_vm0, %v3607_v1  ;;  %3290 = vmatpush3.bf16.msra.mxu0 %v3493_v15  ;;  %v3497_v15 = vld [vmem:[%s4319_s8 + $0x30] sm:$0xff]  }
 0x5c4   : > { %3301 = vmatprep.subr.bf16.mxu0 %v3607_v1 }
 0x682   : > { %v1243_v8 = vpop.f32.mrf.mxu0 }
 0x683   : > { %v1250_v46 = vsel %vm911_vm3, %v1243_v8, -inf }
 0x684   : > { %1251 = vmax.xlane.f32.xlu0 %v1250_v46  ;;  %v3281_v10 = vpop.f32.mrf.mxu0 }
 0x686   : > { %v1246_v47 = vpop.f32.mrf.mxu0 }
 0x687   : > { %v1253_v49 = vsel %vm911_vm3, %v1246_v47, -inf }
 0x688   : > { %1254 = vmax.xlane.f32.xlu1 %v1253_v49  ;;  %v3282_v50 = vpop.f32.mrf.mxu0  ;;  %v3494_v49 = vld [vmem:[%s4318_s7 + $0x8] sm:$0xff]  }
 0x689   : > { %v3495_v50 = vld [vmem:[%s4318_s7] sm:$0xff]  }
 0x70d   : > { %v1252_v51 = vpop.xlane.xlu0 %1251 }
 0x70e   : > { %v1256_v53 = vsub.f32 %v1243_v8, %v1252_v51 }
 0x710   : > { %v1258_v54 = vmul.f32 1.442695, %v1256_v53 }
 0x711   : > { %v1255_v55 = vpop.xlane.xlu1 %1254 }
 0x712   : > { %3547 = vpow2.f32 %v1258_v54  ;;  %v1257_v58 = vsub.f32 %v1246_v47, %v1255_v55 }
 0x714   : > { %v1260_v56 = vmul.f32 1.442695, %v1257_v58 }
 0x716   : > { %3549 = vpow2.f32 %v1260_v56 }
 0x71f   : > { %v3548_v60 = vpop.eup %3547 }
 0x720   : > { %v1262_v61 = vsel %vm911_vm3, %v3548_v60, 0.0 }
 0x721   : > { %1263 = vadd.xlane.f32.xlu0 %v1262_v61 }
 0x723   : > { %v3550_v63 = vpop.eup %3549 }
 0x724   : > { %v1265_v0 = vsel %vm911_vm3, %v3550_v63, 0.0 }
 0x725   : > { %1266 = vadd.xlane.f32.xlu1 %v1265_v0 }
 0x7aa   : > { %v1264_v2 = vpop.xlane.xlu0 %1263 }
 0x7ab   : > { %3551 = vrcp.f32 %v1264_v2 }
 0x7ae   : > { %v1267_v3 = vpop.xlane.xlu1 %1266 }
 0x7af   : > { %3553 = vrcp.f32 %v1267_v3 }
 0x7b8   : > { %v3552_v4 = vpop.eup %3551 }
 0x7b9   : > { %v1270_v7 = vmul.f32 %v3552_v4, %v3548_v60  ;;  %v1462_v4 = vrot.slane %v3872_v52, %v3821_v62 }
 0x7bc   : > { %v3554_v5 = vpop.eup %3553 }
 0x7bd   : > { %v1271_v11 = vmul.f32 %v3554_v5, %v3550_v63  ;;  %v1456_v63 = vrot.slane %v3872_v52, %v3791_v48 }
 0x7bf   : > { %v1272_v14 = vpack.c.bf16 %v1271_v11, %v1270_v7 }
 0x7c1   : > { %3286 = vmatmul.mubr.msk.bf16.vlgmr.msra.gmra.mxu1 %vm911_vm3, %v1272_v14  ;;  %v3496_v14 = vld [vmem:[%s4319_s8 + $0x38] sm:$0xff]  }
 0x7c2   : > { %3296 = vmatpush3.bf16.msra.mxu1 %v3492_v13  ;;  %3297 = vmatprep.mubr.msk.bf16.mxu1 %vm3608_vm0, %v3607_v1 }
 0x7c3   : > { %3309 = vmatprep.subr.bf16.mxu1 %v3607_v1 }
 0x7c9   : > { %3298 = vmatmul.mubr.msk.bf16.vlgmr.msra.gmra.mxu1 %vm911_vm3, %v1027_v33 }
 0x7ca   : > { %3325 = vmatprep.mubr.msk.bf16.mxu1 %vm3608_vm0, %v3607_v1  ;;  %3310 = vmatpush3.bf16.msra.mxu1 %v3496_v14 }
 0x7cb   : > { %3311 = vmatprep.subr.bf16.mxu1 %v3607_v1 }
 0x7ce   : > { %3312 = vmatpush3.bf16.msra.mxu1 %v3497_v15 }
 0x7cf   : > { %3313 = vmatprep.subr.bf16.mxu1 %v3607_v1 }
 0x881   : > { %v1311_v17 = vpop.f32.mrf.mxu1 }
 0x883   : > { %v3287_v18 = vpop.f32.mrf.mxu1 }
 0x884   : > { %v3499_v18 = vld [vmem:[%s4319_s8 + $0x20] sm:$0xff]  }
 0x885   : > { %v1314_v19 = vpop.f32.mrf.mxu1 }
 0x886   : > { %v1318_v20 = vpack.c.bf16 %v1314_v19, %v1311_v17  ;;  %v3498_v17 = vld [vmem:[%s4319_s8 + $0x28] sm:$0xff]   ;;  %v3500_v19 = vld [vmem:[%s4319_s8 + $0x18] sm:$0xff]  }
 0x887   : > { %v3288_v21 = vpop.f32.mrf.mxu1  ;;  %3314 = vmatpush3.bf16.msra.mxu1 %v3498_v17  ;;  %v3504_v17 = vld [vmem:[%s4320_s9 + $0x8] sm:$0xff]  }
 0x888   : > { %3292 = vmatmul.mubr.msk.bf16.vlgmr.msra.gmra.mxu0 %vm911_vm3, %v1318_v20  ;;  %3315 = vmatprep.subr.bf16.mxu1 %v3607_v1  ;;  %v3501_v20 = vld [vmem:[%s4319_s8 + $0x10] sm:$0xff]   ;;  %v3502_v21 = vld [vmem:[%s4319_s8 + $0x8] sm:$0xff]  }
 0x889   : > { %v1412_v23 = vpop.f32.mrf.mxu1  ;;  %3305 = vmatprep.mubr.msk.bf16.mxu0 %vm3608_vm0, %v3607_v1  ;;  %3302 = vmatpush3.bf16.msra.mxu0 %v3494_v49 }
 0x88a   : > { %3303 = vmatprep.subr.bf16.mxu0 %v3607_v1 }
 0x88b   : > { %v3299_v24 = vpop.f32.mrf.mxu1  ;;  %3316 = vmatpush3.bf16.msra.mxu1 %v3499_v18  ;;  %v3505_v18 = vld [vmem:[%s4320_s9] sm:$0xff]  }
 0x88c   : > { %3317 = vmatprep.subr.bf16.mxu1 %v3607_v1  ;;  %v1469_v24 = vrot.slane %v3872_v52, %v3864_v39 }
 0x88d   : > { %v1415_v25 = vpop.f32.mrf.mxu1  ;;  %3304 = vmatpush3.bf16.msra.mxu0 %v3495_v50 }
 0x88e   : > { %3329 = vmatprep.subr.bf16.mxu0 %v3607_v1 }
 0x88f   : > { %v3300_v26 = vpop.f32.mrf.mxu1  ;;  %3318 = vmatpush3.bf16.msra.mxu1 %v3500_v19 }
 0x890   : > { %3319 = vmatprep.subr.bf16.mxu1 %v3607_v1 }
 0x893   : > { %3320 = vmatpush3.bf16.msra.mxu1 %v3501_v20 }
 0x894   : > { %3321 = vmatprep.subr.bf16.mxu1 %v3607_v1 }
 0x897   : > { %3322 = vmatpush3.bf16.msra.mxu1 %v3502_v21 }
 0x898   : > { %3323 = vmatprep.subr.bf16.mxu1 %v3607_v1 }
 0x948   : > { %v1362_v27 = vpop.f32.mrf.mxu0 }
 0x949   : > { %v1413_v28 = vadd.f32 %v1412_v23, %v1362_v27  ;;  %v3503_v23 = vld [vmem:[%s4319_s8] sm:$0xff]  }
 0x94a   : > { %v3293_v30 = vpop.f32.mrf.mxu0  ;;  %3324 = vmatpush3.bf16.msra.mxu1 %v3503_v23 }
 0x94b   : > { %v1419_v31 = vadd.f32 %v1413_v28, %v3754_v16  ;;  %3363 = vmatprep.subr.bf16.mxu1 %v3607_v1 }
 0x94c   : > { %v1365_v32 = vpop.f32.mrf.mxu0 }
 0x94d   : > { %v3934_v33 = vadd.f32 %v1424_v29, %v1419_v31  ;;  %v1416_v35 = vadd.f32 %v1415_v25, %v1365_v32 }
 0x94e   : > { %v3294_v36 = vpop.f32.mrf.mxu0 }
 0x94f   : > { %v1420_v37 = vadd.f32 %v1416_v35, %v3761_v22  ;;  %v1427_v38 = vsel %vm692_vm2, %v3934_v33, 0.0 }
 0x950   : > { %1428 = vadd.xlane.f32.xlu0 %v1427_v38 }
 0x951   : > { %v3939_v40 = vadd.f32 %v1424_v29, %v1420_v37 }
 0x953   : > { %v1430_v41 = vsel %vm692_vm2, %v3939_v40, 0.0 }
 0x954   : > { %1431 = vadd.xlane.f32.xlu1 %v1430_v41 }
 0x9d9   : > { %v1429_v42 = vpop.xlane.xlu0 %1428 }
 0x9da   : > { %v1433_v57 = vmul.f32 0.03125, %v1429_v42 }
 0x9dc   : > { %v1435_v16 = vsub.f32 %v3934_v33, %v1433_v57 }
 0x9dd   : > { %v1432_v43 = vpop.xlane.xlu1 %1431 }
 0x9de   : > { %v1434_v45 = vmul.f32 0.03125, %v1432_v43  ;;  %v1437_v8 = vmul.f32 %v1435_v16, %v1435_v16 }
 0x9e0   : > { %v1436_v46 = vsub.f32 %v3939_v40, %v1434_v45  ;;  %v1439_v22 = vsel %vm692_vm2, %v1437_v8, 0.0 }
 0x9e1   : > { %1440 = vadd.xlane.f32.xlu0 %v1439_v22 }
 0x9e2   : > { %v1438_v10 = vmul.f32 %v1436_v46, %v1436_v46 }
 0x9e4   : > { %v1442_v47 = vsel %vm692_vm2, %v1438_v10, 0.0 }
 0x9e5   : > { %1443 = vadd.xlane.f32.xlu1 %v1442_v47 }
 0xa6a   : > { %v1441_v51 = vpop.xlane.xlu0 %1440 }
 0xa6b   : > { %v1445_v53 = vmul.f32 0.03125, %v1441_v51  ;;  %v1639_v51 = vrot.slane %v3872_v52, %v3818_v59 }
 0xa6d   : > { %v1447_v54 = vadd.f32 1e-05, %v1445_v53 }
 0xa6e   : > { %v1444_v55 = vpop.xlane.xlu1 %1443 }
 0xa6f   : > { %3555 = vrsqrt.f32 %v1447_v54  ;;  %v1446_v58 = vmul.f32 0.03125, %v1444_v55 }
 0xa71   : > { %v1448_v56 = vadd.f32 1e-05, %v1446_v58 }
 0xa73   : > { %3557 = vrsqrt.f32 %v1448_v56 }
 0xa7c   : > { %v3556_v60 = vpop.eup %3555 }
 0xa7d   : > { %v1451_v61 = vmul.f32 %v3556_v60, %v1435_v16 }
 0xa7f   : > { %v1457_v3 = vmul.f32 %v1456_v63, %v1451_v61 }
 0xa80   : > { %v3558_v0 = vpop.eup %3557 }
 0xa81   : > { %v1452_v2 = vmul.f32 %v3558_v0, %v1436_v46  ;;  %v1463_v7 = vadd.f32 %v1462_v4, %v1457_v3 }
 0xa83   : > { %v1458_v5 = vmul.f32 %v1456_v63, %v1452_v2 }
 0xa85   : > { %v1464_v11 = vadd.f32 %v1462_v4, %v1458_v5 }
 0xa87   : > { %v1465_v13 = vpack.c.bf16 %v1464_v11, %v1463_v7 }
 0xa89   : > { %3306 = vmatmul.mubr.msk.bf16.vlgmr.msra.gmra.mxu0 %vm692_vm2, %v1465_v13 }
 0xa8a   : > { %3333 = vmatprep.mubr.msk.bf16.mxu0 %vm3608_vm0, %v3607_v1  ;;  %3330 = vmatpush3.bf16.msra.mxu0 %v3504_v17 }
 0xa8b   : > { %3331 = vmatprep.subr.bf16.mxu0 %v3607_v1 }
 0xa8e   : > { %3332 = vmatpush3.bf16.msra.mxu0 %v3505_v18 }
 0xa8f   : > { %3337 = vmatprep.subr.bf16.mxu0 %v3607_v1 }
 0xb49   : > { %v1519_v25 = vpop.f32.mrf.mxu0 }
 0xb4a   : > { %v1520_v26 = vadd.f32 %v1519_v25, %v1469_v24 }
 0xb4b   : > { %v3307_v27 = vpop.f32.mrf.mxu0 }
 0xb4c   : > { %v1526_v28 = vmul.f32 %v1520_v26, %v1520_v26 }
 0xb4d   : > { %v1522_v29 = vpop.f32.mrf.mxu0 }
 0xb4e   : > { %v1528_v30 = vmul.f32 %v1526_v28, %v1520_v26  ;;  %v1523_v31 = vadd.f32 %v1522_v29, %v1469_v24  ;;  %v1671_v28 = vrot.slane %v3872_v52, %v3901_v34 }
 0xb4f   : > { %v3308_v32 = vpop.f32.mrf.mxu0 }
 0xb50   : > { %v1530_v35 = vmul.f32 0.044715, %v1528_v30  ;;  %v1527_v36 = vmul.f32 %v1523_v31, %v1523_v31  ;;  %v1677_v32 = vrot.slane %v3872_v52, %v3828_v12  ;;  %v3507_v52 = vld [vmem:[%s4322_s11] sm:$0xff]  }
 0xb52   : > { %v1532_v37 = vadd.f32 %v1530_v35, %v1520_v26  ;;  %v1529_v38 = vmul.f32 %v1527_v36, %v1523_v31 }
 0xb54   : > { %v1534_v41 = vmul.f32 0.7978846, %v1532_v37  ;;  %v1531_v42 = vmul.f32 0.044715, %v1529_v38 }
 0xb56   : > { %3559 = vtanh.f32 %v1534_v41  ;;  %v1533_v57 = vadd.f32 %v1531_v42, %v1523_v31  ;;  %v3506_v41 = vld [vmem:[%s4322_s11 + $0x8] sm:$0xff]   ;;  %v3057_v42 = vld [vmem:[%s4313_s2 + $0x20] ss:$0 sm:$0xff] }
 0xb58   : > { %v1535_v16 = vmul.f32 0.7978846, %v1533_v57 }
 0xb5a   : > { %3561 = vtanh.f32 %v1535_v16 }
 0xb63   : > { %v3560_v43 = vpop.eup %3559 }
 0xb64   : > { %v1538_v45 = vadd.f32 1.0, %v3560_v43 }
 0xb66   : > { %v1540_v46 = vmul.f32 0.5, %v1538_v45 }
 0xb67   : > { %v3562_v8 = vpop.eup %3561 }
 0xb68   : > { %v1539_v22 = vadd.f32 1.0, %v3562_v8  ;;  %v1542_v47 = vmul.f32 %v1540_v46, %v1520_v26 }
 0xb6a   : > { %v1541_v10 = vmul.f32 0.5, %v1539_v22  ;;  %v3508_v22 = vld [vmem:[%s4321_s10 + $0x10] sm:$0xff]  }
 0xb6c   : > { %v1543_v49 = vmul.f32 %v1541_v10, %v1523_v31 }
 0xb6e   : > { %v1544_v50 = vpack.c.bf16 %v1543_v49, %v1542_v47  ;;  %v3509_v47 = vld [vmem:[%s4321_s10 + $0x8] sm:$0xff]   ;;  %v3510_v49 = vld [vmem:[%s4321_s10] sm:$0xff]  }
 0xb70   : > { %3326 = vmatmul.mubr.bf16.vlgmr.msra.gmra.mxu1 %v1544_v50 }
 0xb71   : > { %3367 = vmatprep.mubr.msk.bf16.mxu1 %vm3608_vm0, %v3607_v1 }
 0xc30   : > { %v1627_v53 = vpop.f32.mrf.mxu1 }
 0xc31   : > { %v1634_v54 = vadd.f32 %v1627_v53, %v3934_v33 }
 0xc32   : > { %v3327_v55 = vpop.f32.mrf.mxu1 }
 0xc33   : > { %v1640_v58 = vadd.f32 %v1639_v51, %v1634_v54  ;;  %v4061_v55 = vld [vmem:[%s4313_s2 + $0x10] sm:$0xff] }
 0xc34   : > { %v1630_v56 = vpop.f32.mrf.mxu1 }
 0xc35   : > { %v1635_v60 = vadd.f32 %v1630_v56, %v3939_v40  ;;  %v1642_v61 = vsel %vm692_vm2, %v1640_v58, 0.0 }
 0xc36   : > { %1643 = vadd.xlane.f32.xlu0 %v1642_v61  ;;  %v3328_v63 = vpop.f32.mrf.mxu1 }
 0xc37   : > { %v1641_v0 = vadd.f32 %v1639_v51, %v1635_v60 }
 0xc39   : > { %v1645_v2 = vsel %vm692_vm2, %v1641_v0, 0.0 }
 0xc3a   : > { %1646 = vadd.xlane.f32.xlu1 %v1645_v2 }
 0xcbf   : > { %v1644_v3 = vpop.xlane.xlu0 %1643 }
 0xcc0   : > { %v1648_v4 = vmul.f32 0.03125, %v1644_v3 }
 0xcc2   : > { %v1650_v5 = vsub.f32 %v1640_v58, %v1648_v4  ;;  %v1876_v58 = vrot.slane %v4061_v55, %v3742_v9 }
 0xcc3   : > { %v1647_v7 = vpop.xlane.xlu1 %1646 }
 0xcc4   : > { %v1649_v11 = vmul.f32 0.03125, %v1647_v7  ;;  %v1652_v13 = vmul.f32 %v1650_v5, %v1650_v5 }
 0xcc6   : > { %v1651_v33 = vsub.f32 %v1641_v0, %v1649_v11  ;;  %v1654_v14 = vsel %vm692_vm2, %v1652_v13, 0.0 }
 0xcc7   : > { %1655 = vadd.xlane.f32.xlu0 %v1654_v14 }
 0xcc8   : > { %v1653_v15 = vmul.f32 %v1651_v33, %v1651_v33 }
 0xcca   : > { %v1657_v40 = vsel %vm692_vm2, %v1653_v15, 0.0 }
 0xccb   : > { %1658 = vadd.xlane.f32.xlu1 %v1657_v40 }
 0xd50   : > { %v1656_v19 = vpop.xlane.xlu0 %1655 }
 0xd51   : > { %v1660_v20 = vmul.f32 0.03125, %v1656_v19 }
 0xd53   : > { %v1662_v21 = vadd.f32 1e-05, %v1660_v20  ;;  %v3511_v20 = vld [vmem:[%s4323_s12 + $0x8] sm:$0xff]  }
 0xd54   : > { %v1659_v23 = vpop.xlane.xlu1 %1658 }
 0xd55   : > { %3563 = vrsqrt.f32 %v1662_v21  ;;  %v1661_v24 = vmul.f32 0.03125, %v1659_v23  ;;  %v3512_v21 = vld [vmem:[%s4323_s12 + $0x28] sm:$0xff]   ;;  %v3513_v23 = vld [vmem:[%s4323_s12] sm:$0xff]  }
 0xd56   : > { %3364 = vmatpush3.bf16.msra.mxu1 %v3512_v21  ;;  %v3520_v21 = vld [vmem:[%s4323_s12 + $0x50] sm:$0xff]  }
 0xd57   : > { %v1663_v25 = vadd.f32 1e-05, %v1661_v24  ;;  %3365 = vmatprep.subr.bf16.mxu1 %v3607_v1  ;;  %v3514_v24 = vld [vmem:[%s4323_s12 + $0x20] sm:$0xff]  }
 0xd59   : > { %3565 = vrsqrt.f32 %v1663_v25 }
 0xd5a   : > { %3366 = vmatpush3.bf16.msra.mxu1 %v3514_v24 }
 0xd5b   : > { %3379 = vmatprep.subr.bf16.mxu1 %v3607_v1 }
 0xd62   : > { %v3564_v26 = vpop.eup %3563 }
 0xd63   : > { %v1666_v27 = vmul.f32 %v3564_v26, %v1650_v5 }
 0xd65   : > { %v1672_v31 = vmul.f32 %v1671_v28, %v1666_v27 }
 0xd66   : > { %v3566_v29 = vpop.eup %3565 }
 0xd67   : > { %v1667_v30 = vmul.f32 %v3566_v29, %v1651_v33  ;;  %v1678_v36 = vadd.f32 %v1677_v32, %v1672_v31 }
 0xd69   : > { %v1673_v35 = vmul.f32 %v1671_v28, %v1667_v30 }
 0xd6b   : > { %v1679_v37 = vadd.f32 %v1677_v32, %v1673_v35  ;;  %v1958_v32 = vrot.slane %v4061_v55, %v3786_v44 }
 0xd6d   : > { %v1680_v38 = vpack.c.bf16 %v1679_v37, %v1678_v36 }
 0xd6f   : > { %3334 = vmatmul.mubr.msk.bf16.vlgmr.msra.gmra.mxu0 %vm692_vm2, %v1680_v38 }
 0xd70   : > { %3341 = vmatprep.mubr.msk.bf16.mxu0 %vm3608_vm0, %v3607_v1  ;;  %3338 = vmatpush3.bf16.msra.mxu0 %v3506_v41  ;;  %v1964_v41 = vrot.slane %v4061_v55, %v3791_v48 }
 0xd71   : > { %3339 = vmatprep.subr.bf16.mxu0 %v3607_v1 }
 0xd74   : > { %3340 = vmatpush3.bf16.msra.mxu0 %v3507_v52 }
 0xd75   : > { %3345 = vmatprep.subr.bf16.mxu0 %v3607_v1 }
 0xe2f   : > { %v1738_v57 = vpop.f32.mrf.mxu0 }
 0xe30   : > { %v1739_v16 = vadd.f32 %v3057_v42, %v1738_v57 }
 0xe31   : > { %v3335_v43 = vpop.f32.mrf.mxu0 }
 0xe32   : > { %1745 = vst.msk [vmem:[%s554_s19] sm:$0xff] %vm692_vm2, %v1739_v16 }
 0xe33   : > { %v1741_v45 = vpop.f32.mrf.mxu0 }
 0xe34   : > { %v1742_v8 = vadd.f32 %v3057_v42, %v1741_v45  ;;  %v3516_v45 = vld [vmem:[%s4323_s12 + $0x40] sm:$0xff]  }
 0xe35   : > { %v3336_v46 = vpop.f32.mrf.mxu0 }
 0xe36   : > { %1746 = vst.msk [vmem:[%s554_s19 + $0x8] sm:$0xff] %vm692_vm2, %v1742_v8  ;;  %v1753_v10 = vpack.c.bf16 %v1742_v8, %v1739_v16  ;;  %v3515_v16 = vld [vmem:[%s4323_s12 + $0x48] sm:$0xff]  }
 0xe38   : > { %3342 = vmatmul.mubr.msk.bf16.vlgmr.msra.gmra.mxu0 %vm692_vm2, %v1753_v10 }
 0xe39   : > { %3346 = vmatpush3.bf16.msra.mxu0 %v3508_v22  ;;  %3351 = vmatprep.mubr.msk.bf16.mxu0 %vm3608_vm0, %v3607_v1  ;;  %v2031_v22 = vrot.slane %v4061_v55, %v3818_v59 }
 0xe3a   : > { %3347 = vmatprep.subr.bf16.mxu0 %v3607_v1 }
 0xe3d   : > { %3348 = vmatpush3.bf16.msra.mxu0 %v3509_v47 }
 0xe3e   : > { %3349 = vmatprep.subr.bf16.mxu0 %v3607_v1 }
 0xe41   : > { %3350 = vmatpush3.bf16.msra.mxu0 %v3510_v49 }
 0xe42   : > { %3355 = vmatprep.subr.bf16.mxu0 %v3607_v1 }
 0xe44   : > { %3352 = vmatmul.mubr.msk.bf16.vlgmr.msra.gmra.mxu0 %vm595_vm1, %v3732_v6 }
 0xe45   : > { %3359 = vmatprep.mubr.msk.bf16.mxu0 %vm3608_vm0, %v3607_v1  ;;  %3356 = vmatpush3.bf16.msra.mxu0 %v3511_v20  ;;  %v3519_v20 = vld [vmem:[%s4323_s12 + $0x58] sm:$0xff]  }
 0xe46   : > { %3357 = vmatprep.subr.bf16.mxu0 %v3607_v1 }
 0xe49   : > { %3358 = vmatpush3.bf16.msra.mxu0 %v3513_v23  ;;  %v4158_v23 = vld [vmem:[%s4333_s22] sm:$0xff] }
 0xe4a   : > { %3371 = vmatprep.subr.bf16.mxu0 %v3607_v1 }
 0xef8   : > { %v1807_v50 = vpop.f32.mrf.mxu0 }
 0xefa   : > { %v3343_v51 = vpop.f32.mrf.mxu0 }
 0xefb   : > { %v1971_v51 = vrot.slane %v4061_v55, %v3821_v62 }
 0xefc   : > { %v1810_v53 = vpop.f32.mrf.mxu0 }
 0xefe   : > { %v3344_v54 = vpop.f32.mrf.mxu0 }
 0xf04   : > { %v1866_v56 = vpop.f32.mrf.mxu0 }
 0xf05   : > { %v1867_v60 = vadd.f32 %v1866_v56, %v1807_v50 }
 0xf06   : > { %v3353_v61 = vpop.f32.mrf.mxu0 }
 0xf07   : > { %v4065_v63 = vadd.f32 %v1876_v58, %v1867_v60 }
 0xf08   : > { %v1869_v6 = vpop.f32.mrf.mxu0 }
 0xf09   : > { %v1870_v0 = vadd.f32 %v1869_v6, %v1810_v53  ;;  %v1929_v2 = vsel %vm692_vm2, %v4065_v63, 0.0 }
 0xf0a   : > { %1930 = vadd.xlane.f32.xlu0 %v1929_v2  ;;  %v3354_v3 = vpop.f32.mrf.mxu0  ;;  %v2088_v2 = vrot.slane %v4061_v55, %v3828_v12 }
 0xf0b   : > { %v4069_v4 = vadd.f32 %v1876_v58, %v1870_v0 }
 0xf0d   : > { %v1932_v5 = vsel %vm692_vm2, %v4069_v4, 0.0 }
 0xf0e   : > { %1933 = vadd.xlane.f32.xlu1 %v1932_v5 }
 0xf93   : > { %v1931_v7 = vpop.xlane.xlu0 %1930 }
 0xf94   : > { %v1935_v11 = vmul.f32 0.03125, %v1931_v7 }
 0xf96   : > { %v1937_v13 = vsub.f32 %v4065_v63, %v1935_v11 }
 0xf97   : > { %v1934_v33 = vpop.xlane.xlu1 %1933 }
 0xf98   : > { %v1936_v14 = vmul.f32 0.03125, %v1934_v33  ;;  %v1939_v15 = vmul.f32 %v1937_v13, %v1937_v13 }
 0xf9a   : > { %v1938_v40 = vsub.f32 %v4069_v4, %v1936_v14  ;;  %v1941_v17 = vsel %vm692_vm2, %v1939_v15, 0.0 }
 0xf9b   : > { %1942 = vadd.xlane.f32.xlu0 %v1941_v17 }
 0xf9c   : > { %v1940_v18 = vmul.f32 %v1938_v40, %v1938_v40 }
 0xf9e   : > { %v1944_v19 = vsel %vm692_vm2, %v1940_v18, 0.0 }
 0xf9f   : > { %1945 = vadd.xlane.f32.xlu1 %v1944_v19  ;;  %v3518_v19 = vld [vmem:[%s4323_s12 + $0x10] sm:$0xff]  }
0x1024   : > { %v1943_v25 = vpop.xlane.xlu0 %1942 }
0x1025   : > { %v1947_v26 = vmul.f32 0.03125, %v1943_v25 }
0x1027   : > { %v1949_v27 = vadd.f32 1e-05, %v1947_v26 }
0x1028   : > { %v1946_v28 = vpop.xlane.xlu1 %1945 }
0x1029   : > { %3567 = vrsqrt.f32 %v1949_v27  ;;  %v1948_v29 = vmul.f32 0.03125, %v1946_v28  ;;  %v4164_v27 = vld [vmem:[%s4333_s22 + $0x8] sm:$0xff] }
0x102b   : > { %v1950_v30 = vadd.f32 1e-05, %v1948_v29 }
0x102d   : > { %3569 = vrsqrt.f32 %v1950_v30 }
0x1036   : > { %v3568_v31 = vpop.eup %3567 }
0x1037   : > { %v1953_v35 = vmul.f32 %v3568_v31, %v1937_v13 }
0x1039   : > { %v1959_v37 = vmul.f32 %v1958_v32, %v1953_v35  ;;  %v2265_v35 = vrot.slane %v4061_v55, %v3864_v39 }
0x103a   : > { %v3570_v36 = vpop.eup %3569 }
0x103b   : > { %v1954_v38 = vmul.f32 %v3570_v36, %v1938_v40  ;;  %v1965_v42 = vadd.f32 %v1964_v41, %v1959_v37  ;;  %v3517_v40 = vld [vmem:[%s4323_s12 + $0x18] sm:$0xff]  }
0x103d   : > { %v1960_v52 = vmul.f32 %v1958_v32, %v1954_v38 }
0x103f   : > { %v1966_v57 = vadd.f32 %v1964_v41, %v1960_v52 }
0x1041   : > { %v4100_v43 = vpack.c.bf16 %v1966_v57, %v1965_v42  ;;  %v4174_v42 = vld [vmem:[%s4313_s2 + $0x18] sm:$0xff] }
0x1043   : > { %3360 = vmatmul.mubr.msk.bf16.vlgmr.msra.gmra.mxu0 %vm692_vm2, %v4100_v43  ;;  %3368 = vmatmul.mubr.msk.bf16.vlgmr.msra.gmra.mxu1 %vm692_vm2, %v4100_v43 }
0x1044   : > { %3372 = vmatpush3.bf16.msra.mxu0 %v3515_v16  ;;  %3375 = vmatprep.mubr.msk.bf16.mxu0 %vm3608_vm0, %v3607_v1 }
0x1045   : > { %3373 = vmatprep.subr.bf16.mxu0 %v3607_v1  ;;  %3381 = vmatprep.mubr.msk.bf16.mxu1 %vm3608_vm0, %v3607_v1 }
0x1048   : > { %3374 = vmatpush3.bf16.msra.mxu0 %v3516_v45 }
0x1049   : > { %3385 = vmatprep.subr.bf16.mxu0 %v3607_v1 }
0x104b   : > { %3376 = vmatmul.mubr.msk.bf16.vlgmr.msra.gmra.mxu0 %vm692_vm2, %v4100_v43 }
0x104c   : > { %3387 = vmatprep.mubr.msk.bf16.mxu0 %vm3608_vm0, %v3607_v1 }
0x1103   : > { %v2021_v8 = vpop.f32.mrf.mxu0  ;;  %v2078_v46 = vpop.f32.mrf.mxu1 }
0x1104   : > { %v2079_v53 = vadd.f32 %v2078_v46, %v2031_v22  ;;  %v2022_v0 = vadd.f32 %v2021_v8, %v1971_v51 }
0x1105   : > { %v3361_v10 = vpop.f32.mrf.mxu0  ;;  %v3369_v47 = vpop.f32.mrf.mxu1 }
0x1106   : > { %v2142_v13 = vmul.f32 0.25, %v2022_v0 }
0x1107   : > { %v2024_v49 = vpop.f32.mrf.mxu0  ;;  %v2081_v50 = vpop.f32.mrf.mxu1 }
0x1108   : > { %v2082_v54 = vadd.f32 %v2081_v50, %v2031_v22  ;;  %v2025_v60 = vadd.f32 %v2024_v49, %v1971_v51  ;;  %v2379_v22 = vrot.slane %v4174_v42, %v3742_v9 }
0x1109   : > { %v3362_v58 = vpop.f32.mrf.mxu0  ;;  %v3370_v56 = vpop.f32.mrf.mxu1 }
0x110a   : > { %v2145_v61 = vpack.c.bf16 %v2082_v54, %v2079_v53  ;;  %v2143_v7 = vmul.f32 0.25, %v2025_v60 }
0x110b   : > { %v2135_v6 = vpop.f32.mrf.mxu0 }
0x110c   : > { %v2150_v3 = vsel %vm911_vm3, %v2145_v61, 0  ;;  %v2136_v33 = vadd.f32 %v2135_v6, %v2088_v2  ;;  %v2144_v17 = vpack.c.bf16 %v2143_v7, %v2142_v13 }
0x110d   : > { %v3377_v5 = vpop.f32.mrf.mxu0  ;;  %3380 = vmatpush3.bf16.xpose.msra.mxu1 %v2150_v3 }
0x110e   : > { %3391 = vmatprep.subr.bf16.mxu1 %v3607_v1 }
0x110f   : > { %v2138_v11 = vpop.f32.mrf.mxu0 }
0x1110   : > { %v2139_v14 = vadd.f32 %v2138_v11, %v2088_v2 }
0x1111   : > { %v3378_v15 = vpop.f32.mrf.mxu0 }
0x1112   : > { %v2216_v18 = vpack.c.bf16 %v2139_v14, %v2136_v33  ;;  %v3521_v15 = vld [vmem:[%s4323_s12 + $0x38] sm:$0xff]  }
0x1114   : > { %3382 = vmatmul.mubr.msk.bf16.vlgmr.msra.gmra.mxu1 %vm911_vm3, %v2144_v17  ;;  %3386 = vmatpush3.bf16.msra.mxu0 %v2216_v18  ;;  %v3522_v17 = vld [vmem:[%s4323_s12 + $0x30] sm:$0xff]  }
0x1115   : > { %3392 = vmatpush3.bf16.msra.mxu1 %v3517_v40  ;;  %3395 = vmatprep.mubr.msk.bf16.mxu1 %vm3608_vm0, %v3607_v1 }
0x1116   : > { %3393 = vmatprep.subr.bf16.mxu1 %v3607_v1  ;;  %3399 = vmatprep.subr.bf16.mxu0 %v3607_v1 }
0x1119   : > { %3394 = vmatpush3.bf16.msra.mxu1 %v3518_v19 }
0x111a   : > { %3407 = vmatprep.subr.bf16.mxu1 %v3607_v1 }
0x111c   : > { %3396 = vmatmul.mubr.msk.bf16.vlgmr.msra.gmra.mxu1 %vm692_vm2, %v4100_v43 }
0x111d   : > { %3408 = vmatpush3.bf16.msra.mxu1 %v3519_v20  ;;  %3411 = vmatprep.mubr.msk.bf16.mxu1 %vm3608_vm0, %v3607_v1 }
0x111e   : > { %3409 = vmatprep.subr.bf16.mxu1 %v3607_v1 }
0x1121   : > { %3410 = vmatpush3.bf16.msra.mxu1 %v3520_v21 }
0x1122   : > { %3421 = vmatprep.subr.bf16.mxu1 %v3607_v1 }
0x1124   : > { %3412 = vmatmul.mubr.msk.bf16.vlgmr.msra.gmra.mxu1 %vm692_vm2, %v4100_v43 }
0x1125   : > { %3423 = vmatprep.mubr.msk.bf16.mxu1 %vm3608_vm0, %v3607_v1 }
0x11d4   : > { %v2186_v24 = vpop.f32.mrf.mxu1 }
0x11d5   : > { %v2187_v25 = vadd.f32 %v2186_v24, %v4158_v23 }
0x11d6   : > { %v3383_v26 = vpop.f32.mrf.mxu1 }
0x11d7   : > { %v2193_v28 = vsel %vm911_vm3, %v2187_v25, -inf  ;;  %v2322_v26 = vrot.slane %v4061_v55, %v3901_v34 }
0x11d8   : > { %2194 = vmax.xlane.f32.xlu0 %v2193_v28  ;;  %v2189_v29 = vpop.f32.mrf.mxu1 }
0x11d9   : > { %v2190_v30 = vadd.f32 %v2189_v29, %v4164_v27 }
0x11da   : > { %v3384_v31 = vpop.f32.mrf.mxu1 }
0x11db   : > { %v2196_v32 = vsel %vm911_vm3, %v2190_v30, -inf }
0x11dc   : > { %2197 = vmax.xlane.f32.xlu1 %v2196_v32  ;;  %v2312_v36 = vpop.f32.mrf.mxu1 }
0x11dd   : > { %v2313_v38 = vadd.f32 %v2312_v36, %v2265_v35 }
0x11de   : > { %v3397_v37 = vpop.f32.mrf.mxu1 }
0x11df   : > { %v4176_v16 = vmul.f32 0.25, %v2313_v38 }
0x11e0   : > { %v2315_v41 = vpop.f32.mrf.mxu1 }
0x11e1   : > { %v2316_v52 = vadd.f32 %v2315_v41, %v2265_v35 }
0x11e2   : > { %v3398_v57 = vpop.f32.mrf.mxu1 }
0x11e3   : > { %v2434_v45 = vmul.f32 0.25, %v2316_v52 }
0x11e4   : > { %v2426_v8 = vpop.f32.mrf.mxu1 }
0x11e5   : > { %v2435_v46 = vpack.c.bf16 %v2434_v45, %v4176_v16  ;;  %v2427_v49 = vadd.f32 %v2426_v8, %v2379_v22 }
0x11e6   : > { %v3413_v10 = vpop.f32.mrf.mxu1 }
0x11e8   : > { %v2429_v47 = vpop.f32.mrf.mxu1 }
0x11e9   : > { %v2430_v50 = vadd.f32 %v2429_v47, %v2379_v22 }
0x11ea   : > { %v3414_v51 = vpop.f32.mrf.mxu1 }
0x11eb   : > { %v2507_v53 = vpack.c.bf16 %v2430_v50, %v2427_v49 }
0x11ed   : > { %3422 = vmatpush3.bf16.msra.mxu1 %v2507_v53 }
0x11ee   : > { %3433 = vmatprep.subr.bf16.mxu1 %v3607_v1 }
0x1261   : > { %v2195_v54 = vpop.xlane.xlu0 %2194 }
0x1262   : > { %v2199_v58 = vsub.f32 %v2187_v25, %v2195_v54 }
0x1264   : > { %v2201_v56 = vmul.f32 1.442695, %v2199_v58 }
0x1265   : > { %v2198_v60 = vpop.xlane.xlu1 %2197 }
0x1266   : > { %3571 = vpow2.f32 %v2201_v56  ;;  %v2200_v61 = vsub.f32 %v2190_v30, %v2198_v60 }
0x1268   : > { %v2203_v6 = vmul.f32 1.442695, %v2200_v61  ;;  %v3523_v61 = vld [vmem:[%s4324_s13] sm:$0xff]  }
0x126a   : > { %3573 = vpow2.f32 %v2203_v6 }
0x1273   : > { %v3572_v0 = vpop.eup %3571 }
0x1274   : > { %v2205_v9 = vsel %vm911_vm3, %v3572_v0, 0.0 }
0x1275   : > { %2206 = vadd.xlane.f32.xlu0 %v2205_v9 }
0x1277   : > { %v3574_v2 = vpop.eup %3573 }
0x1278   : > { %v2208_v3 = vsel %vm911_vm3, %v3574_v2, 0.0 }
0x1279   : > { %2209 = vadd.xlane.f32.xlu1 %v2208_v3 }
0x12fe   : > { %v2207_v5 = vpop.xlane.xlu0 %2206 }
0x12ff   : > { %3575 = vrcp.f32 %v2207_v5 }
0x1302   : > { %v2210_v7 = vpop.xlane.xlu1 %2209 }
0x1303   : > { %3577 = vrcp.f32 %v2210_v7 }
0x130c   : > { %v3576_v11 = vpop.eup %3575 }
0x130d   : > { %v2213_v33 = vmul.f32 %v3576_v11, %v3572_v0  ;;  %v3524_v0 = vld [vmem:[%s4324_s13 + $0x8] sm:$0xff]  }
0x1310   : > { %v3578_v13 = vpop.eup %3577 }
0x1311   : > { %v2214_v14 = vmul.f32 %v3578_v13, %v3574_v2 }
0x1313   : > { %v2215_v40 = vpack.c.bf16 %v2214_v14, %v2213_v33 }
0x1315   : > { %3388 = vmatmul.mubr.msk.bf16.vlgmr.msra.gmra.mxu0 %vm911_vm3, %v2215_v40 }
0x1316   : > { %3400 = vmatpush3.bf16.msra.mxu0 %v3521_v15  ;;  %3403 = vmatprep.mubr.msk.bf16.mxu0 %vm3608_vm0, %v3607_v1 }
0x1317   : > { %3401 = vmatprep.subr.bf16.mxu0 %v3607_v1 }
0x131a   : > { %3402 = vmatpush3.bf16.msra.mxu0 %v3522_v17  ;;  %v2658_v17 = vrot.slane %v4174_v42, %v3786_v44 }
0x131b   : > { %3415 = vmatprep.subr.bf16.mxu0 %v3607_v1 }
0x131d   : > { %3404 = vmatmul.mubr.msk.bf16.vlgmr.msra.gmra.mxu0 %vm692_vm2, %v4100_v43 }
0x131e   : > { %3417 = vmatprep.mubr.msk.bf16.mxu0 %vm3608_vm0, %v3607_v1 }
0x13d5   : > { %v2254_v18 = vpop.f32.mrf.mxu0 }
0x13d7   : > { %v3389_v19 = vpop.f32.mrf.mxu0 }
0x13d9   : > { %v2257_v20 = vpop.f32.mrf.mxu0 }
0x13da   : > { %v2261_v21 = vpack.c.bf16 %v2257_v20, %v2254_v18 }
0x13db   : > { %v3390_v24 = vpop.f32.mrf.mxu0 }
0x13dd   : > { %v2369_v25 = vpop.f32.mrf.mxu0 }
0x13de   : > { %v2370_v30 = vadd.f32 %v2369_v25, %v2322_v26 }
0x13df   : > { %v3405_v28 = vpop.f32.mrf.mxu0 }
0x13e1   : > { %v2372_v29 = vpop.f32.mrf.mxu0 }
0x13e2   : > { %v2373_v31 = vadd.f32 %v2372_v29, %v2322_v26 }
0x13e3   : > { %v3406_v32 = vpop.f32.mrf.mxu0 }
0x13e4   : > { %v2436_v35 = vpack.c.bf16 %v2373_v31, %v2370_v30 }
0x13e6   : > { %v2441_v43 = vsel %vm911_vm3, %v2436_v35, 0 }
0x13e7   : > { %3416 = vmatpush3.bf16.xpose.msra.mxu0 %v2441_v43 }
0x13e8   : > { %3427 = vmatprep.subr.bf16.mxu0 %v3607_v1 }
0x13ee   : > { %3418 = vmatmul.mubr.msk.bf16.vlgmr.msra.gmra.mxu0 %vm911_vm3, %v2435_v46 }
0x13ef   : > { %3429 = vmatprep.mubr.msk.bf16.mxu0 %vm3608_vm0, %v3607_v1  ;;  %3428 = vmatpush3.bf16.msra.mxu0 %v3524_v0  ;;  %v3533_v0 = vld [vmem:[%s4326_s15 + $0x8] sm:$0xff]  }
0x13f0   : > { %3439 = vmatprep.subr.bf16.mxu0 %v3607_v1 }
0x14ae   : > { %v2477_v36 = vpop.f32.mrf.mxu0 }
0x14af   : > { %v2478_v37 = vadd.f32 %v2477_v36, %v4158_v23 }
0x14b0   : > { %v3419_v55 = vpop.f32.mrf.mxu0 }
0x14b1   : > { %v2484_v38 = vsel %vm911_vm3, %v2478_v37, -inf }
0x14b2   : > { %2485 = vmax.xlane.f32.xlu0 %v2484_v38  ;;  %v2480_v41 = vpop.f32.mrf.mxu0  ;;  %v3525_v38 = vld [vmem:[%s4325_s14 + $0x8] sm:$0xff]  }
0x14b3   : > { %v2481_v52 = vadd.f32 %v2480_v41, %v4164_v27  ;;  %v3526_v41 = vld [vmem:[%s4325_s14] sm:$0xff]  }
0x14b4   : > { %v3420_v57 = vpop.f32.mrf.mxu0 }
0x14b5   : > { %v2487_v16 = vsel %vm911_vm3, %v2481_v52, -inf }
0x14b6   : > { %2488 = vmax.xlane.f32.xlu1 %v2487_v16 }
0x153b   : > { %v2486_v45 = vpop.xlane.xlu0 %2485 }
0x153c   : > { %v2490_v8 = vsub.f32 %v2478_v37, %v2486_v45 }
0x153e   : > { %v2492_v46 = vmul.f32 1.442695, %v2490_v8 }
0x153f   : > { %v2489_v22 = vpop.xlane.xlu1 %2488 }
0x1540   : > { %3579 = vpow2.f32 %v2492_v46  ;;  %v2491_v10 = vsub.f32 %v2481_v52, %v2489_v22 }
0x1542   : > { %v2494_v47 = vmul.f32 1.442695, %v2491_v10 }
0x1544   : > { %3581 = vpow2.f32 %v2494_v47  ;;  %v2690_v47 = vrot.slane %v4174_v42, %v3791_v48  ;;  %v3528_v48 = vld [vmem:[%s4326_s15 + $0x30] sm:$0xff]  }
0x154d   : > { %v3580_v23 = vpop.eup %3579 }
0x154e   : > { %v2496_v49 = vsel %vm911_vm3, %v3580_v23, 0.0 }
0x154f   : > { %2497 = vadd.xlane.f32.xlu0 %v2496_v49 }
0x1551   : > { %v3582_v50 = vpop.eup %3581 }
0x1552   : > { %v2499_v51 = vsel %vm911_vm3, %v3582_v50, 0.0 }
0x1553   : > { %2500 = vadd.xlane.f32.xlu1 %v2499_v51  ;;  %v2696_v51 = vrot.slane %v4174_v42, %v3821_v62  ;;  %v3529_v62 = vld [vmem:[%s4326_s15 + $0x28] sm:$0xff]  }
0x15d8   : > { %v2498_v27 = vpop.xlane.xlu0 %2497 }
0x15d9   : > { %3583 = vrcp.f32 %v2498_v27 }
0x15dc   : > { %v2501_v53 = vpop.xlane.xlu1 %2500 }
0x15dd   : > { %3585 = vrcp.f32 %v2501_v53 }
0x15e6   : > { %v3584_v54 = vpop.eup %3583 }
0x15e7   : > { %v2504_v56 = vmul.f32 %v3584_v54, %v3580_v23 }
0x15ea   : > { %v3586_v58 = vpop.eup %3585 }
0x15eb   : > { %v2505_v60 = vmul.f32 %v3586_v58, %v3582_v50 }
0x15ed   : > { %v2506_v6 = vpack.c.bf16 %v2505_v60, %v2504_v56  ;;  %v3527_v56 = vld [vmem:[%s4326_s15 + $0x38] sm:$0xff]   ;;  %v3530_v60 = vld [vmem:[%s4326_s15 + $0x20] sm:$0xff]  }
0x15ef   : > { %3424 = vmatmul.mubr.msk.bf16.vlgmr.msra.gmra.mxu1 %vm911_vm3, %v2506_v6  ;;  %v3532_v6 = vld [vmem:[%s4326_s15 + $0x10] sm:$0xff]  }
0x15f0   : > { %3434 = vmatpush3.bf16.msra.mxu1 %v3523_v61  ;;  %3435 = vmatprep.mubr.msk.bf16.mxu1 %vm3608_vm0, %v3607_v1  ;;  %v3531_v61 = vld [vmem:[%s4326_s15 + $0x18] sm:$0xff]  }
0x15f1   : > { %3447 = vmatprep.subr.bf16.mxu1 %v3607_v1 }
0x15f7   : > { %3436 = vmatmul.mubr.msk.bf16.vlgmr.msra.gmra.mxu1 %vm911_vm3, %v2261_v21 }
0x15f8   : > { %3463 = vmatprep.mubr.msk.bf16.mxu1 %vm3608_vm0, %v3607_v1  ;;  %3448 = vmatpush3.bf16.msra.mxu1 %v3527_v56  ;;  %v2905_v56 = vrot.slane %v4174_v42, %v3901_v34 }
0x15f9   : > { %3449 = vmatprep.subr.bf16.mxu1 %v3607_v1 }
0x15fc   : > { %3450 = vmatpush3.bf16.msra.mxu1 %v3528_v48 }
0x15fd   : > { %3451 = vmatprep.subr.bf16.mxu1 %v3607_v1 }
0x1600   : > { %3452 = vmatpush3.bf16.msra.mxu1 %v3529_v62 }
0x1601   : > { %3453 = vmatprep.subr.bf16.mxu1 %v3607_v1 }
0x1604   : > { %3454 = vmatpush3.bf16.msra.mxu1 %v3530_v60  ;;  %v2911_v60 = vrot.slane %v4174_v42, %v3828_v12 }
0x1605   : > { %3455 = vmatprep.subr.bf16.mxu1 %v3607_v1 }
0x1608   : > { %3456 = vmatpush3.bf16.msra.mxu1 %v3531_v61 }
0x1609   : > { %3457 = vmatprep.subr.bf16.mxu1 %v3607_v1 }
0x160c   : > { %3458 = vmatpush3.bf16.msra.mxu1 %v3532_v6 }
0x160d   : > { %3459 = vmatprep.subr.bf16.mxu1 %v3607_v1 }
0x1610   : > { %3460 = vmatpush3.bf16.msra.mxu1 %v3533_v0 }
0x1611   : > { %3461 = vmatprep.subr.bf16.mxu1 %v3607_v1 }
0x16af   : > { %v2545_v9 = vpop.f32.mrf.mxu1 }
0x16b1   : > { %v3425_v2 = vpop.f32.mrf.mxu1 }
0x16b2   : > { %v2703_v2 = vrot.slane %v4174_v42, %v3864_v39 }
0x16b3   : > { %v2548_v3 = vpop.f32.mrf.mxu1 }
0x16b4   : > { %v2552_v5 = vpack.c.bf16 %v2548_v3, %v2545_v9  ;;  %v3534_v9 = vld [vmem:[%s4326_s15] sm:$0xff]  }
0x16b5   : > { %v3426_v7 = vpop.f32.mrf.mxu1  ;;  %3462 = vmatpush3.bf16.msra.mxu1 %v3534_v9 }
0x16b6   : > { %3430 = vmatmul.mubr.msk.bf16.vlgmr.msra.gmra.mxu0 %vm911_vm3, %v2552_v5 }
0x16b7   : > { %v2646_v11 = vpop.f32.mrf.mxu1  ;;  %3443 = vmatprep.mubr.msk.bf16.mxu0 %vm3608_vm0, %v3607_v1  ;;  %3440 = vmatpush3.bf16.msra.mxu0 %v3525_v38 }
0x16b8   : > { %3441 = vmatprep.subr.bf16.mxu0 %v3607_v1 }
0x16b9   : > { %v3437_v13 = vpop.f32.mrf.mxu1 }
0x16bb   : > { %v2649_v33 = vpop.f32.mrf.mxu1  ;;  %3442 = vmatpush3.bf16.msra.mxu0 %v3526_v41 }
0x16bd   : > { %v3438_v14 = vpop.f32.mrf.mxu1 }
0x1776   : > { %v2596_v15 = vpop.f32.mrf.mxu0 }
0x1777   : > { %v2647_v40 = vadd.f32 %v2646_v11, %v2596_v15 }
0x1778   : > { %v3431_v18 = vpop.f32.mrf.mxu0 }
0x1779   : > { %v2653_v19 = vadd.f32 %v2647_v40, %v4065_v63 }
0x177a   : > { %v2599_v20 = vpop.f32.mrf.mxu0 }
0x177b   : > { %v4232_v21 = vadd.f32 %v2658_v17, %v2653_v19  ;;  %v2650_v24 = vadd.f32 %v2649_v33, %v2599_v20 }
0x177c   : > { %v3432_v25 = vpop.f32.mrf.mxu0 }
0x177d   : > { %v2654_v26 = vadd.f32 %v2650_v24, %v4069_v4  ;;  %v2661_v28 = vsel %vm692_vm2, %v4232_v21, 0.0 }
0x177e   : > { %2662 = vadd.xlane.f32.xlu0 %v2661_v28 }
0x177f   : > { %v4237_v29 = vadd.f32 %v2658_v17, %v2654_v26 }
0x1781   : > { %v2664_v30 = vsel %vm692_vm2, %v4237_v29, 0.0 }
0x1782   : > { %2665 = vadd.xlane.f32.xlu1 %v2664_v30 }
0x1807   : > { %v2663_v44 = vpop.xlane.xlu0 %2662 }
0x1808   : > { %v2667_v31 = vmul.f32 0.03125, %v2663_v44 }
0x180a   : > { %v2669_v63 = vsub.f32 %v4232_v21, %v2667_v31 }
0x180b   : > { %v2666_v32 = vpop.xlane.xlu1 %2665 }
0x180c   : > { %v2668_v35 = vmul.f32 0.03125, %v2666_v32  ;;  %v2671_v43 = vmul.f32 %v2669_v63, %v2669_v63 }
0x180e   : > { %v2670_v36 = vsub.f32 %v4237_v29, %v2668_v35  ;;  %v2673_v4 = vsel %vm692_vm2, %v2671_v43, 0.0  ;;  %v2873_v43 = vrot.slane %v4174_v42, %v3818_v59 }
0x180f   : > { %2674 = vadd.xlane.f32.xlu0 %v2673_v4 }
0x1810   : > { %v2672_v37 = vmul.f32 %v2670_v36, %v2670_v36 }
0x1812   : > { %v2676_v55 = vsel %vm692_vm2, %v2672_v37, 0.0 }
0x1813   : > { %2677 = vadd.xlane.f32.xlu1 %v2676_v55 }
0x1898   : > { %v2675_v52 = vpop.xlane.xlu0 %2674 }
0x1899   : > { %v2679_v57 = vmul.f32 0.03125, %v2675_v52 }
0x189b   : > { %v2681_v16 = vadd.f32 1e-05, %v2679_v57 }
0x189c   : > { %v2678_v45 = vpop.xlane.xlu1 %2677 }
0x189d   : > { %3587 = vrsqrt.f32 %v2681_v16  ;;  %v2680_v8 = vmul.f32 0.03125, %v2678_v45 }
0x189f   : > { %v2682_v46 = vadd.f32 1e-05, %v2680_v8 }
0x18a1   : > { %3589 = vrsqrt.f32 %v2682_v46 }
0x18aa   : > { %v3588_v22 = vpop.eup %3587 }
0x18ab   : > { %v2685_v10 = vmul.f32 %v3588_v22, %v2669_v63 }
0x18ad   : > { %v2691_v50 = vmul.f32 %v2690_v47, %v2685_v10 }
0x18ae   : > { %v3590_v23 = vpop.eup %3589 }
0x18af   : > { %v2686_v49 = vmul.f32 %v3590_v23, %v2670_v36  ;;  %v2697_v53 = vadd.f32 %v2696_v51, %v2691_v50 }
0x18b1   : > { %v2692_v27 = vmul.f32 %v2690_v47, %v2686_v49 }
0x18b3   : > { %v2698_v54 = vadd.f32 %v2696_v51, %v2692_v27 }
0x18b5   : > { %v2699_v58 = vpack.c.bf16 %v2698_v54, %v2697_v53 }
0x18b7   : > { %3444 = vmatmul.mubr.msk.bf16.vlgmr.msra.gmra.mxu0 %vm692_vm2, %v2699_v58 }
0x1977   : > { %v2753_v3 = vpop.f32.mrf.mxu0 }
0x1978   : > { %v2754_v5 = vadd.f32 %v2753_v3, %v2703_v2 }
0x1979   : > { %v3445_v7 = vpop.f32.mrf.mxu0 }
0x197a   : > { %v2760_v11 = vmul.f32 %v2754_v5, %v2754_v5 }
0x197b   : > { %v2756_v13 = vpop.f32.mrf.mxu0 }
0x197c   : > { %v2762_v33 = vmul.f32 %v2760_v11, %v2754_v5  ;;  %v2757_v14 = vadd.f32 %v2756_v13, %v2703_v2 }
0x197d   : > { %v3446_v15 = vpop.f32.mrf.mxu0 }
0x197e   : > { %v2764_v40 = vmul.f32 0.044715, %v2762_v33  ;;  %v2761_v17 = vmul.f32 %v2757_v14, %v2757_v14 }
0x1980   : > { %v2766_v18 = vadd.f32 %v2764_v40, %v2754_v5  ;;  %v2763_v1 = vmul.f32 %v2761_v17, %v2757_v14 }
0x1982   : > { %v2768_v19 = vmul.f32 0.7978846, %v2766_v18  ;;  %v2765_v20 = vmul.f32 0.044715, %v2763_v1 }
0x1984   : > { %3591 = vtanh.f32 %v2768_v19  ;;  %v2767_v24 = vadd.f32 %v2765_v20, %v2757_v14 }
0x1986   : > { %v2769_v25 = vmul.f32 0.7978846, %v2767_v24 }
0x1988   : > { %3593 = vtanh.f32 %v2769_v25 }
0x1991   : > { %v3592_v26 = vpop.eup %3591 }
0x1992   : > { %v2772_v39 = vadd.f32 1.0, %v3592_v26 }
0x1994   : > { %v2774_v30 = vmul.f32 0.5, %v2772_v39 }
0x1995   : > { %v3594_v28 = vpop.eup %3593 }
0x1996   : > { %v2773_v44 = vadd.f32 1.0, %v3594_v28  ;;  %v2776_v63 = vmul.f32 %v2774_v30, %v2754_v5 }
0x1998   : > { %v2775_v31 = vmul.f32 0.5, %v2773_v44 }
0x199a   : > { %v2777_v32 = vmul.f32 %v2775_v31, %v2757_v14 }
0x199c   : > { %v2778_v35 = vpack.c.bf16 %v2777_v32, %v2776_v63 }
0x199e   : > { %3464 = vmatmul.mubr.bf16.vlgmr.msra.gmra.mxu1 %v2778_v35 }
0x1a5e   : > { %v2861_v36 = vpop.f32.mrf.mxu1 }
0x1a5f   : > { %v2868_v4 = vadd.f32 %v2861_v36, %v4232_v21 }
0x1a60   : > { %v3465_v37 = vpop.f32.mrf.mxu1 }
0x1a61   : > { %v2874_v55 = vadd.f32 %v2873_v43, %v2868_v4 }
0x1a62   : > { %v2864_v38 = vpop.f32.mrf.mxu1 }
0x1a63   : > { %v2869_v41 = vadd.f32 %v2864_v38, %v4237_v29  ;;  %v2876_v52 = vsel %vm692_vm2, %v2874_v55, 0.0 }
0x1a64   : > { %2877 = vadd.xlane.f32.xlu0 %v2876_v52  ;;  %v3466_v57 = vpop.f32.mrf.mxu1 }
0x1a65   : > { %v2875_v16 = vadd.f32 %v2873_v43, %v2869_v41 }
0x1a67   : > { %v2879_v45 = vsel %vm692_vm2, %v2875_v16, 0.0 }
0x1a68   : > { %2880 = vadd.xlane.f32.xlu1 %v2879_v45 }
0x1aed   : > { %v2878_v8 = vpop.xlane.xlu0 %2877 }
0x1aee   : > { %v2882_v46 = vmul.f32 0.03125, %v2878_v8 }
0x1af0   : > { %v2884_v22 = vsub.f32 %v2874_v55, %v2882_v46 }
0x1af1   : > { %v2881_v59 = vpop.xlane.xlu1 %2880 }
0x1af2   : > { %v2883_v10 = vmul.f32 0.03125, %v2881_v59  ;;  %v2886_v47 = vmul.f32 %v2884_v22, %v2884_v22 }
0x1af4   : > { %v2885_v21 = vsub.f32 %v2875_v16, %v2883_v10  ;;  %v2888_v23 = vsel %vm692_vm2, %v2886_v47, 0.0 }
0x1af5   : > { %2889 = vadd.xlane.f32.xlu0 %v2888_v23 }
0x1af6   : > { %v2887_v49 = vmul.f32 %v2885_v21, %v2885_v21 }
0x1af8   : > { %v2891_v29 = vsel %vm692_vm2, %v2887_v49, 0.0 }
0x1af9   : > { %2892 = vadd.xlane.f32.xlu1 %v2891_v29 }
0x1b7e   : > { %v2890_v50 = vpop.xlane.xlu0 %2889 }
0x1b7f   : > { %v2894_v51 = vmul.f32 0.03125, %v2890_v50 }
0x1b81   : > { %v2896_v27 = vadd.f32 1e-05, %v2894_v51 }
0x1b82   : > { %v2893_v53 = vpop.xlane.xlu1 %2892 }
0x1b83   : > { %3595 = vrsqrt.f32 %v2896_v27  ;;  %v2895_v54 = vmul.f32 0.03125, %v2893_v53 }
0x1b85   : > { %v2897_v58 = vadd.f32 1e-05, %v2895_v54 }
0x1b87   : > { %3597 = vrsqrt.f32 %v2897_v58 }
0x1b90   : > { %v3596_v48 = vpop.eup %3595 }
0x1b91   : > { %v2900_v62 = vmul.f32 %v3596_v48, %v2884_v22 }
0x1b93   : > { %v2906_v61 = vmul.f32 %v2905_v56, %v2900_v62 }
0x1b94   : > { %v3598_v6 = vpop.eup %3597 }
0x1b95   : > { %v2901_v0 = vmul.f32 %v3598_v6, %v2885_v21  ;;  %v2912_v9 = vadd.f32 %v2911_v60, %v2906_v61 }
0x1b97   : > { %v2907_v2 = vmul.f32 %v2905_v56, %v2901_v0  ;;  %v2914_v5 = vsel %vm692_vm2, %v2912_v9, 0.0 }
0x1b99   : > { %v2913_v3 = vadd.f32 %v2911_v60, %v2907_v2 }
0x1b9b   : > { %v2915_v7 = vsel %vm692_vm2, %v2913_v3, 0.0 }
0x1b9c   : > { %v2916_v11 = vadd.f32 %v2915_v7, %v2914_v5 }
0x1b9e   : > { %v2917_v13 = vrot.slane %v2916_v11, 4 }
0x1ba0   : > { %v2918_v33 = vadd.f32 %v2917_v13, %v2916_v11 }
0x1ba2   : > { %v2919_v34 = vrot.slane %v2918_v33, 2 }
0x1ba4   : > { %v2920_v14 = vadd.f32 %v2919_v34, %v2918_v33 }
0x1ba6   : > { %v2921_v15 = vrot.slane %v2920_v14, 1 }
0x1ba8   : > { %v2922_v40 = vadd.f32 %v2921_v15, %v2920_v14 }
0x1baa   : > { %v2924_v12 = vmul.f32 0.0625, %v2922_v40 }
0x1bac   : > { %2926 = vst.msk [vmem:[%s557_s21] sm:$0x1] %vm2925_vm4, %v2924_v12 }
0x1bad PF: > { %s28_s24 = sadd.s32 1, %s3605_s24  }
0x1bae   : > { %p25_p4 = scmp.ge.s32.totalorder %s28_s24, 4  }
0x1bb0   :  { %27 = sbr.rel (!%p25_p4) target bundleno = 3 (0x3), region = 126 }

</bundles_post_ra>
